<compile_context>
chip_gen: v7x
topology: tpu7x:2x2x1
jax: 0.10.0
libtpu: 0.0.40
codegen_flags: <defaults>
</compile_context>

<pallas_src>
import jax
import jax.numpy as jnp
from jax.experimental import pallas as pl
from jax.experimental.pallas import tpu as pltpu


def autopad(k, p=None):
    if p is None:
        p = k // 2 if isinstance(k, int) else [x // 2 for x in k]
    return p


def _round_up(x, m):
    return (x + m - 1) // m * m


def _vmem_capacity_bytes():
    try:
        info = pltpu.get_tpu_info()
        cap = getattr(info, "vmem_capacity_bytes", None)
        if cap:
            return int(cap)
    except Exception:
        pass
    return 64 * 1024 * 1024  # conservative default (v7x per-TensorCore VMEM)


def _pick_c2_tile(c2p, vmem_cap):
    # v5e/v6e (128 MiB VMEM) can afford wider channel tiles than v7x (64 MiB).
    tc2_max = 512 if vmem_cap >= 100 * 1024 * 1024 else 256
    if c2p <= tc2_max:
        return c2p
    for d in range(tc2_max // 128, 0, -1):
        cand = 128 * d
        if c2p % cand == 0:
            return cand
    return 128


def _pick_h_tile(Ho, Wo, Wpx, cin, kw_taps, tc2, in_bytes, vmem_cap):
    """Largest output-row tile whose (layout-padded) VMEM footprint fits."""
    budget = vmem_cap // 2                      # headroom for Mosaic scratch
    lane = 128
    in_row = _round_up(Wpx, 8) * _round_up(cin, lane) * in_bytes
    out_row = _round_up(Wo, 8) * tc2 * 4
    lhs_row = _round_up(Wo, 8) * _round_up(cin, lane) * in_bytes
    acc_row = _round_up(Wo, 8) * tc2 * 4
    w_bytes = kw_taps * _round_up(cin, 8) * tc2 * in_bytes
    fixed = 2 * w_bytes + 2 * 8 * tc2 * 4
    per_row = 2 * in_row + 2 * out_row + acc_row + 2 * lhs_row + out_row
    ho_t = (budget - fixed) // max(per_row, 1)
    return int(max(1, min(Ho, ho_t, 512)))


def _make_kernel(kw_taps, w_stride, ho_t, wo, apply_act):
    """kw_taps shifted matmuls into a VMEM acc + folded-BN bias + Mish."""

    def kernel(x_ref, w_ref, b_ref, o_ref, acc_ref):
        # x_ref: (1, ho_t, Wpx, cin)   w_ref: (kw_taps, cin, TC2)
        # b_ref: (1, TC2)              o_ref: (1, ho_t, wo, TC2)
        # acc_ref: (ho_t*wo, TC2) f32 VMEM scratch accumulator
        cin = x_ref.shape[-1]
        tc2 = o_ref.shape[-1]

        for t in range(kw_taps):                       # static, unrolled
            if w_stride == 1:
                patch = x_ref[0, :, pl.ds(t, wo), :]
            else:
                patch = x_ref[0, :, pl.ds(t, wo, w_stride), :]
            lhs = patch.reshape(ho_t * wo, cin)        # channels stay on lanes
            contrib = jnp.dot(lhs, w_ref[t],
                              preferred_element_type=jnp.float32)
            if t == 0:
                acc_ref[...] = contrib
            else:
                acc_ref[...] += contrib

        y = acc_ref[...] + b_ref[...]                  # folded BN bias

        if apply_act:
            # Mish with a single exp: with t = exp(y),
            #   tanh(softplus(y)) = (t^2 + 2t) / (t^2 + 2t + 2)
            te = jnp.exp(jnp.minimum(y, 20.0))         # guard keeps exp bounded
            num = te * (te + 2.0)
            mish = y * (num / (num + 2.0))
            y = jnp.where(y > 20.0, y, mish)

        o_ref[0] = y.reshape(ho_t, wo, tc2).astype(o_ref.dtype)

    return kernel


def conv_bn_mish(x, weight, gamma, beta, running_mean, running_var,
                 *, k=1, s=1, p=None, eps=1e-5, act=True,
                 compute_dtype=jnp.float32):
    """Conv.forward (Conv2d no-bias -> BatchNorm2d eval -> Mish), NCHW in/out.

    x:      (N, C1, H, W)  float32
    weight: (C2, C1, k, k) float32  (groups=1)
    """
    N, C1, H, W = x.shape
    C2 = weight.shape[0]
    assert weight.shape == (C2, C1, k, k), "grouped conv (g>1) not supported"
    pad = autopad(k, p)
    Ho = (H + 2 * pad - k) // s + 1
    Wo = (W + 2 * pad - k) // s + 1
    Wp = W + 2 * pad

    # NCHW -> NHWC (channels on lanes) + spatial zero padding.
    x_nhwc = jnp.transpose(x.astype(jnp.float32), (0, 2, 3, 1))
    xp = jnp.pad(x_nhwc, ((0, 0), (pad, pad), (pad, pad), (0, 0))) if pad else x_nhwc

    # Fold the k vertical taps (and the row stride) into the channel axis:
    #   x_rows[n, ho, w, kh*C1 + c] = xp[n, ho*s + kh, w, c]
    if k > 1:
        rows = [xp[:, kh:kh + (Ho - 1) * s + 1:s, :, :] for kh in range(k)]
        x_rows = jnp.concatenate(rows, axis=-1)        # (N, Ho, Wp, k*C1)
        kw_taps, w_stride = k, s
    else:
        x_rows = xp[:, ::s, ::s, :] if s > 1 else xp   # (N, Ho, Wo, C1)
        kw_taps, w_stride = 1, 1
    cin = x_rows.shape[-1]
    Wpx = x_rows.shape[2]

    # Fold inference BatchNorm: scale into the weights, bias stays.
    inv_std = 1.0 / jnp.sqrt(running_var.astype(jnp.float32) + eps)
    scale = gamma.astype(jnp.float32) * inv_std                    # (C2,)
    bias = beta.astype(jnp.float32) - running_mean.astype(jnp.float32) * scale

    # weight (C2,C1,kh,kw) -> (kw, kh*C1, C2), BN scale folded; matches the
    # lhs channel ordering (kh*C1 + c) per horizontal tap kw.
    w_t = jnp.transpose(weight.astype(jnp.float32), (3, 2, 1, 0)) * scale
    w_taps = w_t.reshape(kw_taps, cin, C2)

    # Pad output channels to a multiple of 128: lane-dense stores + MXU width.
    C2p = _round_up(C2, 128)
    if C2p != C2:
        w_taps = jnp.pad(w_taps, ((0, 0), (0, 0), (0, C2p - C2)))
        bias = jnp.pad(bias, (0, C2p - C2))
    bias = bias.reshape(1, C2p)

    # Optional bf16 MXU operands (accuracy-relaxing; off by default).
    in_dtype = jnp.dtype(compute_dtype)
    if in_dtype != jnp.float32:
        x_rows = x_rows.astype(in_dtype)
        w_taps = w_taps.astype(in_dtype)
    in_bytes = in_dtype.itemsize

    # Per-generation, layout-padding-aware tile selection.
    vmem_cap = _vmem_capacity_bytes()
    TC2 = _pick_c2_tile(C2p, vmem_cap)
    Ho_t = _pick_h_tile(Ho, Wo, Wpx, cin, kw_taps, TC2, in_bytes, vmem_cap)
    Ho_pad = _round_up(Ho, Ho_t)
    if Ho_pad != Ho:
        x_rows = jnp.pad(x_rows, ((0, 0), (0, Ho_pad - Ho), (0, 0), (0, 0)))

    lane = 128
    in_blk = Ho_t * _round_up(Wpx, 8) * _round_up(cin, lane) * in_bytes
    out_blk = Ho_t * _round_up(Wo, 8) * TC2 * 4
    acc_blk = _round_up(Ho_t * Wo, 8) * TC2 * 4
    lhs_blk = Ho_t * _round_up(Wo, 8) * _round_up(cin, lane) * in_bytes
    w_blk = kw_taps * _round_up(cin, 8) * TC2 * in_bytes
    est = (2 * in_blk + 2 * out_blk + acc_blk + 2 * lhs_blk + 2 * w_blk
           + 2 * 8 * TC2 * 4)
    vmem_limit = int(min(max(2 * est, 32 * 1024 * 1024), vmem_cap * 3 // 4))

    grid = (N, C2p // TC2, Ho_pad // Ho_t)   # row tile innermost: weights stay
    kernel = _make_kernel(kw_taps, w_stride, Ho_t, Wo, act)

    out = pl.pallas_call(
        kernel,
        out_shape=jax.ShapeDtypeStruct((N, Ho_pad, Wo, C2p), jnp.float32),
        grid_spec=pltpu.PrefetchScalarGridSpec(
            num_scalar_prefetch=0,
            grid=grid,
            in_specs=[
                # one row-band of the kh-folded image per step (no halo needed)
                pl.BlockSpec((1, Ho_t, Wpx, cin),
                             lambda n, jc, hi: (n, hi, 0, 0)),
                # BN-scaled weights for this C2 tile (resident across hi)
                pl.BlockSpec((kw_taps, cin, TC2),
                             lambda n, jc, hi: (0, 0, jc)),
                # folded BN bias for this C2 tile
                pl.BlockSpec((1, TC2), lambda n, jc, hi: (0, jc)),
            ],
            out_specs=pl.BlockSpec((1, Ho_t, Wo, TC2),
                                   lambda n, jc, hi: (n, hi, 0, jc)),
            scratch_shapes=[pltpu.VMEM((Ho_t * Wo, TC2), jnp.float32)],
        ),
        compiler_params=pltpu.CompilerParams(
            dimension_semantics=("parallel", "parallel", "parallel"),
            vmem_limit_bytes=vmem_limit),
    )(x_rows, w_taps, bias)

    # Back to the module's NCHW interface (drop row/channel padding).
    return jnp.transpose(out[:, :Ho, :, :C2], (0, 3, 1, 2))


def _reference(x, weight, gamma, beta, running_mean, running_var,
               *, k, s, p=None, eps=1e-5):
    pad = autopad(k, p)
    y = jax.lax.conv_general_dilated(
        x, weight, window_strides=(s, s),
        padding=[(pad, pad), (pad, pad)],
        dimension_numbers=("NCHW", "OIHW", "NCHW"),
        precision=jax.lax.Precision.HIGHEST)
    sc = (gamma / jnp.sqrt(running_var + eps)).reshape(1, -1, 1, 1)
    bs = (beta - running_mean * gamma / jnp.sqrt(running_var + eps)).reshape(1, -1, 1, 1)
    y = y * sc + bs
    return y * jnp.tanh(jax.nn.softplus(y))


if __name__ == "__main__":
    key = jax.random.PRNGKey(0)

    def _run_case(N, C1, C2, H, W, k, s, case_key):
        kx, kw, kg, kb, km, kv = jax.random.split(case_key, 6)
        x = jax.random.normal(kx, (N, C1, H, W), dtype=jnp.float32)
        weight = 0.1 * jax.random.normal(kw, (C2, C1, k, k), dtype=jnp.float32)
        gamma = 1.0 + 0.1 * jax.random.normal(kg, (C2,), dtype=jnp.float32)
        beta = 0.1 * jax.random.normal(kb, (C2,), dtype=jnp.float32)
        running_mean = 0.1 * jax.random.normal(km, (C2,), dtype=jnp.float32)
        running_var = 1.0 + 0.1 * jax.random.uniform(kv, (C2,), dtype=jnp.float32)

        y = conv_bn_mish(x, weight, gamma, beta, running_mean, running_var,
                         k=k, s=s)
        y = jax.block_until_ready(y)
        y_ref = _reference(x, weight, gamma, beta, running_mean, running_var,
                           k=k, s=s)

        pad = autopad(k)
        Ho = (H + 2 * pad - k) // s + 1
        Wo = (W + 2 * pad - k) // s + 1
        assert y.shape == (N, C2, Ho, Wo), y.shape
        err = float(jnp.max(jnp.abs(y - y_ref)))
        assert jnp.allclose(y, y_ref, atol=2e-5, rtol=2e-5), err

    k1, k2 = jax.random.split(key)
    # Conv(c1=4, c2=8, k=3, s=1): typical GSConv mixing conv.
    _run_case(2, 4, 8, 16, 16, 3, 1, k1)
    # Conv(c1=4, c2=8, k=1, s=1): the module default kernel size.
    _run_case(2, 4, 8, 16, 16, 1, 1, k2)

    print("KERNEL_OK")
</pallas_src>

<mosaic_0001>
module attributes {stable_mosaic.version = 11 : i64} {
  func.func @kernel(%arg0: i32, %arg1: i32, %arg2: i32, %arg3: memref<1x16x18x12xf32, #tpu.memory_space<vmem>>, %arg4: memref<3x12x128xf32, #tpu.memory_space<vmem>>, %arg5: memref<1x128xf32, #tpu.memory_space<vmem>>, %arg6: memref<1x16x16x128xf32, #tpu.memory_space<vmem>>, %arg7: memref<256x128xf32, #tpu.memory_space<vmem>>) attributes {dimension_semantics = [#tpu.dimension_semantics<parallel>, #tpu.dimension_semantics<parallel>, #tpu.dimension_semantics<parallel>], iteration_bounds = array<i64: 2, 1, 1>, scalar_prefetch = 0 : i64, scratch_operands = 1 : i64, tpu.core_type = #tpu.core_type<tc>, window_params = [{transform_indices = @transform_0, window_bounds = array<i64: 1, 16, 18, 12>}, {transform_indices = @transform_1, window_bounds = array<i64: 3, 12, 128>}, {transform_indices = @transform_2, window_bounds = array<i64: 1, 128>}, {transform_indices = @transform_3, window_bounds = array<i64: 1, 16, 16, 128>}]} {
    %c0 = arith.constant 0 : index
    %c0_0 = arith.constant 0 : index
    %c0_1 = arith.constant 0 : index
    %c0_2 = arith.constant 0 : index
    %0 = vector.load %arg3[%c0, %c0_0, %c0_1, %c0_2] : memref<1x16x18x12xf32, #tpu.memory_space<vmem>>, vector<1x16x16x12xf32>
    %1 = vector.shape_cast %0 : vector<1x16x16x12xf32> to vector<16x16x12xf32>
    %2 = vector.shape_cast %1 : vector<16x16x12xf32> to vector<256x12xf32>
    %c0_3 = arith.constant 0 : index
    %c0_4 = arith.constant 0 : index
    %c0_5 = arith.constant 0 : index
    %3 = vector.load %arg4[%c0_3, %c0_4, %c0_5] : memref<3x12x128xf32, #tpu.memory_space<vmem>>, vector<1x12x128xf32>
    %4 = vector.shape_cast %3 : vector<1x12x128xf32> to vector<12x128xf32>
    %cst = arith.constant dense<0.000000e+00> : vector<256x128xf32>
    %5 = tpu.matmul %2, %4, %cst {dimension_numbers = #tpu.dot_dimension_numbers<[1], [0], [0], [1], [0, 0, 1, 1], [], []>} : vector<256x12xf32>, vector<12x128xf32>, vector<256x128xf32> -> vector<256x128xf32>
    %c0_6 = arith.constant 0 : index
    %c0_7 = arith.constant 0 : index
    %6 = vector.load %arg7[%c0_6, %c0_7] : memref<256x128xf32, #tpu.memory_space<vmem>>, vector<256x128xf32>
    tpu.vector_store %arg7[%c0_6, %c0_7], %5 {strides = array<i32>} : memref<256x128xf32, #tpu.memory_space<vmem>>, vector<256x128xf32>,
    %c0_8 = arith.constant 0 : index
    %c0_9 = arith.constant 0 : index
    %c1 = arith.constant 1 : index
    %c0_10 = arith.constant 0 : index
    %7 = vector.load %arg3[%c0_8, %c0_9, %c1, %c0_10] : memref<1x16x18x12xf32, #tpu.memory_space<vmem>>, vector<1x16x16x12xf32>
    %8 = vector.shape_cast %7 : vector<1x16x16x12xf32> to vector<16x16x12xf32>
    %9 = vector.shape_cast %8 : vector<16x16x12xf32> to vector<256x12xf32>
    %c1_11 = arith.constant 1 : index
    %c0_12 = arith.constant 0 : index
    %c0_13 = arith.constant 0 : index
    %10 = vector.load %arg4[%c1_11, %c0_12, %c0_13] : memref<3x12x128xf32, #tpu.memory_space<vmem>>, vector<1x12x128xf32>
    %11 = vector.shape_cast %10 : vector<1x12x128xf32> to vector<12x128xf32>
    %cst_14 = arith.constant dense<0.000000e+00> : vector<256x128xf32>
    %12 = tpu.matmul %9, %11, %cst_14 {dimension_numbers = #tpu.dot_dimension_numbers<[1], [0], [0], [1], [0, 0, 1, 1], [], []>} : vector<256x12xf32>, vector<12x128xf32>, vector<256x128xf32> -> vector<256x128xf32>
    %c0_15 = arith.constant 0 : index
    %c0_16 = arith.constant 0 : index
    %13 = vector.load %arg7[%c0_15, %c0_16] : memref<256x128xf32, #tpu.memory_space<vmem>>, vector<256x128xf32>
    %14 = arith.addf %13, %12 : vector<256x128xf32>
    %c0_17 = arith.constant 0 : index
    %c0_18 = arith.constant 0 : index
    %15 = vector.load %arg7[%c0_17, %c0_18] : memref<256x128xf32, #tpu.memory_space<vmem>>, vector<256x128xf32>
    tpu.vector_store %arg7[%c0_17, %c0_18], %14 {strides = array<i32>} : memref<256x128xf32, #tpu.memory_space<vmem>>, vector<256x128xf32>,
    %c0_19 = arith.constant 0 : index
    %c0_20 = arith.constant 0 : index
    %c2 = arith.constant 2 : index
    %c0_21 = arith.constant 0 : index
    %16 = vector.load %arg3[%c0_19, %c0_20, %c2, %c0_21] : memref<1x16x18x12xf32, #tpu.memory_space<vmem>>, vector<1x16x16x12xf32>
    %17 = vector.shape_cast %16 : vector<1x16x16x12xf32> to vector<16x16x12xf32>
    %18 = vector.shape_cast %17 : vector<16x16x12xf32> to vector<256x12xf32>
    %c2_22 = arith.constant 2 : index
    %c0_23 = arith.constant 0 : index
    %c0_24 = arith.constant 0 : index
    %19 = vector.load %arg4[%c2_22, %c0_23, %c0_24] : memref<3x12x128xf32, #tpu.memory_space<vmem>>, vector<1x12x128xf32>
    %20 = vector.shape_cast %19 : vector<1x12x128xf32> to vector<12x128xf32>
    %cst_25 = arith.constant dense<0.000000e+00> : vector<256x128xf32>
    %21 = tpu.matmul %18, %20, %cst_25 {dimension_numbers = #tpu.dot_dimension_numbers<[1], [0], [0], [1], [0, 0, 1, 1], [], []>} : vector<256x12xf32>, vector<12x128xf32>, vector<256x128xf32> -> vector<256x128xf32>
    %c0_26 = arith.constant 0 : index
    %c0_27 = arith.constant 0 : index
    %22 = vector.load %arg7[%c0_26, %c0_27] : memref<256x128xf32, #tpu.memory_space<vmem>>, vector<256x128xf32>
    %23 = arith.addf %22, %21 : vector<256x128xf32>
    %c0_28 = arith.constant 0 : index
    %c0_29 = arith.constant 0 : index
    %24 = vector.load %arg7[%c0_28, %c0_29] : memref<256x128xf32, #tpu.memory_space<vmem>>, vector<256x128xf32>
    tpu.vector_store %arg7[%c0_28, %c0_29], %23 {strides = array<i32>} : memref<256x128xf32, #tpu.memory_space<vmem>>, vector<256x128xf32>,
    %c0_30 = arith.constant 0 : index
    %c0_31 = arith.constant 0 : index
    %25 = vector.load %arg7[%c0_30, %c0_31] : memref<256x128xf32, #tpu.memory_space<vmem>>, vector<256x128xf32>
    %c0_32 = arith.constant 0 : index
    %c0_33 = arith.constant 0 : index
    %26 = vector.load %arg5[%c0_32, %c0_33] : memref<1x128xf32, #tpu.memory_space<vmem>>, vector<1x128xf32>
    %27 = vector.broadcast %26 : vector<1x128xf32> to vector<256x128xf32>
    %28 = arith.addf %25, %27 : vector<256x128xf32>
    %cst_34 = arith.constant 2.000000e+01 : f32
    %29 = vector.broadcast %cst_34 : f32 to vector<256x128xf32>
    %30 = arith.minimumf %28, %29 : vector<256x128xf32>
    %31 = math.exp %30 : vector<256x128xf32>
    %cst_35 = arith.constant 2.000000e+00 : f32
    %32 = vector.broadcast %cst_35 : f32 to vector<256x128xf32>
    %33 = arith.addf %31, %32 : vector<256x128xf32>
    %34 = arith.mulf %31, %33 : vector<256x128xf32>
    %cst_36 = arith.constant 2.000000e+00 : f32
    %35 = vector.broadcast %cst_36 : f32 to vector<256x128xf32>
    %36 = arith.addf %34, %35 : vector<256x128xf32>
    %37 = arith.divf %34, %36 : vector<256x128xf32>
    %38 = arith.mulf %28, %37 : vector<256x128xf32>
    %cst_37 = arith.constant 2.000000e+01 : f32
    %39 = vector.broadcast %cst_37 : f32 to vector<256x128xf32>
    %40 = arith.cmpf ogt, %28, %39 : vector<256x128xf32>
    %41 = arith.select %40, %28, %38 : vector<256x128xi1>, vector<256x128xf32>
    %42 = vector.shape_cast %41 : vector<256x128xf32> to vector<16x16x128xf32>
    %c0_38 = arith.constant 0 : index
    %c0_39 = arith.constant 0 : index
    %c0_40 = arith.constant 0 : index
    %c0_41 = arith.constant 0 : index
    %43 = vector.load %arg6[%c0_38, %c0_39, %c0_40, %c0_41] : memref<1x16x16x128xf32, #tpu.memory_space<vmem>>, vector<1x16x16x128xf32>
    %44 = vector.shape_cast %43 : vector<1x16x16x128xf32> to vector<16x16x128xf32>
    %45 = vector.shape_cast %42 : vector<16x16x128xf32> to vector<1x16x16x128xf32>
    tpu.vector_store %arg6[%c0_38, %c0_39, %c0_40, %c0_41], %45 {strides = array<i32>} : memref<1x16x16x128xf32, #tpu.memory_space<vmem>>, vector<1x16x16x128xf32>,
    return
  }
  func.func @transform_0(%arg0: i32, %arg1: i32, %arg2: i32) -> (i32, i32, i32, i32) {
    %c0_i32 = arith.constant 0 : i32
    %c0_i32_0 = arith.constant 0 : i32
    %c0_i32_1 = arith.constant 0 : i32
    return %arg0, %arg2, %c0_i32, %c0_i32_0 : i32, i32, i32, i32
  }
  func.func @transform_1(%arg0: i32, %arg1: i32, %arg2: i32) -> (i32, i32, i32) {
    %c0_i32 = arith.constant 0 : i32
    %c0_i32_0 = arith.constant 0 : i32
    %c0_i32_1 = arith.constant 0 : i32
    return %c0_i32, %c0_i32_0, %arg1 : i32, i32, i32
  }
  func.func @transform_2(%arg0: i32, %arg1: i32, %arg2: i32) -> (i32, i32) {
    %c0_i32 = arith.constant 0 : i32
    %c0_i32_0 = arith.constant 0 : i32
    return %c0_i32, %arg1 : i32, i32
  }
  func.func @transform_3(%arg0: i32, %arg1: i32, %arg2: i32) -> (i32, i32, i32, i32) {
    %c0_i32 = arith.constant 0 : i32
    %c0_i32_0 = arith.constant 0 : i32
    return %arg0, %arg2, %c0_i32, %arg1 : i32, i32, i32, i32
  }
}

</mosaic_0001>

<bundles_post_ra>
// kernel: tpu_custom_call.1
= control target key start
LH: loop header
LB: loop body
LE: loop exit
PB: predicated region body
PF: predicated region fallthrough
CT: control target
= control target key end

     0   :  { %8 = vsyncpa [#allocation4], 0  ;;  %s3733_s0 = inlined_call_operand.vmem [shape: f32[2,16,18,12], index: 0, kind: input, shape index: {}]   ;;  %s3734_s1 = inlined_call_operand.vmem [shape: f32[3,12,128], index: 1, kind: input, shape index: {}]   ;;  %s3735_s2 = inlined_call_operand.vmem [shape: f32[1,128], index: 2, kind: input, shape index: {}]   ;;  %s3736_s3 = inlined_call_operand.hbm [shape: f32[2,16,16,128], index: 3, kind: output, shape index: {}]  }
   0x1   :  { %10 = vsyncpa [#allocation4 + $0x1], 0  ;;  %s2883_s12 = smov 0   ;;  %s2885_s13 = smov 0  }
   0x2   :  { %s2887_s14 = smov 0   ;;  %s2889_s15 = smov 0  }
   0x3   :  { %s2891_s16 = smov 0   ;;  %s2893_s17 = smov 0  }
   0x4 LB: > { %s2131_s18 = sadd.s32 4294967295, %s2857_s17   ;;  %s2132_s19 = sadd.s32 4294967294, %s2857_s17   ;;  %s2857_s17 = sphi %s2893_s17, %s16_s17   ;;  %s2853_s16 = sphi %s2891_s16, %s3745_s16   ;;  %s2849_s15 = sphi %s2889_s15, %s3744_s15   ;;  %s2845_s14 = sphi %s2887_s14, %s3743_s14   ;;  %s2841_s13 = sphi %s2885_s13, %s3742_s13   ;;  %s2837_s12 = sphi %s2883_s12, %s3741_s12  }
   0x5   : > { %s35_s20 = sadd.s32 1, %s2853_s16  ;;  %s126_s21 = sadd.s32 1, %s2845_s14 }
   0x6   : > { %p37_p0 = scmp.ge.s32.totalorder %s35_s20, 2  ;;  %p136_p1 = scmp.ne.s32.totalorder %s2845_s14, %s2841_s13 }
   0x7   : > { %p137_p2 = scmp.eq.s32.totalorder %s2131_s18, 1  ;;  %p142_p3 = scmp.ne.s32.totalorder %s2841_s13, %s2837_s12 }
   0x8   : > { %s3747_s20 = smov (%p37_p0, %s35_s20), 0  ;;  %p143_p5 = scmp.eq.s32.totalorder %s2132_s19, 1 }
   0x9   : > { %p2923_p4 = por %p137_p2, %p136_p1  ;;  %s119_s23 = ssub.s32 %s2853_s16, %s3747_s20 }
   0xa   : > { %p2137_p6 = scmp.ge.s32.totalorder %s2857_s17, 1  ;;  %p124_p7 = scmp.eq.s32.totalorder %s119_s23, 0 }
   0xb   : > { %p2930_p8 = por %p143_p5, %p142_p3  ;;  %p188_p9 = scmp.lt.s32.totalorder %s2857_s17, 3 }
   0xc   : > { %s2936_s25 = scalar_select %p124_p7, %s2845_s14, %s126_s21  }
   0xd   : > { %p189_p10 = pnand %p2137_p6, %p188_p9 }
   0xe   : > { %v275_v0 = vld [vmem:[%s3734_s1] sm:$0xff] (!%p189_p10)  ;;  %v276_v1 = vld [vmem:[%s3734_s1 + $0x8] sm:$0xf] (!%p189_p10)  ;;  %vm374_vm0 = vcmask (!%p189_p10), 1043456   ;;  %v2173_v2 = vld [vmem:[%s3734_s1 + $0x10] sm:$0xff] (!%p189_p10)  ;;  %vm2859_vm1 = vmmov (!%p189_p10), 1  }
   0xf   : > { %192 = sbr.rel (%p189_p10) target bundleno = 421 (0x1a5), region = 32  ;;  %v2508_v3 = vpack.c.bf16 (!%p189_p10), %v276_v1, %v275_v0  ;;  %vm2947_vm2 = vmpackc.low (!%p189_p10), %vm374_vm0, %vm2859_vm1  ;;  %v2174_v5 = vld [vmem:[%s3734_s1 + $0x18] sm:$0xf] (!%p189_p10)  ;;  %p225_p11 = scmp.lt.s32.totalorder (!%p189_p10), %s2849_s15, 1  ;;  %v2208_v6 = vld [vmem:[%s3734_s1 + $0x20] sm:$0xff] (!%p189_p10)  ;;  %vm277_vm3 = vcmask (!%p189_p10), 97280  }
  0x10   : > { %v2514_v7 = vpack.c.bf16 (!%p189_p10), %v2174_v5, %v2173_v2  ;;  %v2209_v8 = vld [vmem:[%s3734_s1 + $0x28] sm:$0xf] (!%p189_p10)  ;;  %s221_s28 = sand.u32 (!%p189_p10), 1, %s2841_s13   ;;  %s2249_s4 = sshll.u32 (!%p189_p10), %s2849_s15, 12 }
  0x11   : > { %2510 = vmatprep.subr.msk.bf16.mxu1 (!%p189_p10), %vm2947_vm2, %v2508_v3  ;;  %v2520_v9 = vpack.c.bf16 (!%p189_p10), %v2209_v8, %v2208_v6  ;;  %s3291_s29 = sshll.u32 (!%p189_p10), %s221_s28, 8  ;;  %s3678_s8 = scalar_lea.hbm (!%p189_p10), %s3736_s3, %s2249_s4 }
  0x12   : > { %2516 = vmatprep.subr.msk.bf16.mxu0 (!%p189_p10), %vm2947_vm2, %v2514_v7  ;;  %2513 = vmatpush3.bf16.msk.msra.mxu1 (!%p189_p10), %vm2947_vm2, %v2508_v3  ;;  %s3331_s30 = scalar_lea.vmem (!%p189_p10), [#allocation3], %s3291_s29  ;;  %s2860_s10 = smov (!%p189_p10), [#allocation3]  }
  0x13   : > { %2519 = vmatpush3.bf16.msk.msra.mxu0 (!%p189_p10), %vm2947_vm2, %v2514_v7  ;;  %2526 = vmatprep.subr.msk.bf16.mxu1 (!%p189_p10), %vm2947_vm2, %v2514_v7  ;;  %s2018_s5 = sshll.u32 (!%p189_p10), %s3331_s30, 4  ;;  %s3680_s5 = int_to_ptr.vmem [resolvable:$true] %s2018_s5 }
  0x14   : > { %2522 = vmatprep.subr.msk.bf16.mxu0 (!%p189_p10), %vm2947_vm2, %v2520_v9  ;;  %s2779_s9 = scalar_lea.vmem (!%p189_p10), %s3680_s5, 4096 }
  0x15   : > { %p2780_p12 = scmp.ne.s32.totalorder (!%p189_p10), %s3680_s5, %s2779_s9 }
  0x16   : > { %s226_s11 = scalar_select %p225_p11, %s2849_s15, 1 }
  0x17   : > { %s3687_s15 = scalar_lea.sflag [#allocation4], %s221_s28  ;;  %p2781_p13 = pnand %p2780_p12, %p2923_p4 }
  0x18   : > { %s2592_s18 = smul.u32 384, %s226_s11  ;;  %s2783_s11 = sshll.u32 %s2860_s10, 4  ;;  %s2784_s11 = int_to_ptr.vmem [resolvable:$false] %s2783_s11 }
  0x19   : > { %p2782_p0 = pneg %p2781_p13  ;;  %p2786_p1 = scmp.lt.s32.totalorder %s3680_s5, %s2784_s11 }
  0x1a   : > { %s2977_s23 = scalar_lea.vmem %s3733_s0, %s2592_s18  ;;  %s2785_s18 = scalar_lea.vmem %s2784_s11, 8192 }
  0x1b   : > { %v243_v10 = vld [vmem:[%s2977_s23] sm:$0xff]  ;;  %v244_v12 = vld [vmem:[%s2977_s23 + $0x8] sm:$0xff]  ;;  %v245_v14 = vld [vmem:[%s2977_s23 + $0x18] sm:$0xff]  ;;  %p2787_p2 = scmp.lt.s32.totalorder %s2785_s18, %s2779_s9 }
  0x1c   : > { %v635_v11 = vld [vmem:[%s2977_s23 + $0x1] sm:$0xff]  ;;  %2356 = vmatprep.mubr.msk.f32.mxu1 %vm277_vm3, %v243_v10  ;;  %v636_v13 = vld [vmem:[%s2977_s23 + $0x9] sm:$0xff]  ;;  %v637_v15 = vld [vmem:[%s2977_s23 + $0x19] sm:$0xff] }
  0x1d   : > { %2408 = vmatprep.mubr.msk.f32.mxu0 %vm277_vm3, %v635_v11  ;;  %2357 = vmatmul.mubr.msk.f32.vlgmr.msra.gmra.mrb[0].mxu1 %vm277_vm3, %v244_v12  ;;  %v246_v16 = vld [vmem:[%s2977_s23 + $0x20] sm:$0xff]  ;;  %v247_v18 = vld [vmem:[%s2977_s23 + $0x30] sm:$0xff]  ;;  %v248_v20 = vld [vmem:[%s2977_s23 + $0x38] sm:$0xff]  ;;  %p2788_p3 = por %p2787_p2, %p2786_p1 }
  0x1e   : > { %2409 = vmatmul.mubr.msk.f32.vlgmr.msra.gmra.mrb[0].mxu0 %vm277_vm3, %v636_v13  ;;  %2527 = vmatpush3.bf16.msk.msra.mxu1 %vm2947_vm2, %v2514_v7  ;;  %v638_v17 = vld [vmem:[%s2977_s23 + $0x21] sm:$0xff]  ;;  %v639_v19 = vld [vmem:[%s2977_s23 + $0x31] sm:$0xff]  ;;  %v640_v21 = vld [vmem:[%s2977_s23 + $0x39] sm:$0xff] }
  0x1f   : > { %2525 = vmatpush3.bf16.msk.msra.mxu0 %vm2947_vm2, %v2520_v9  ;;  %2359 = vmatprep.mubr.msk.f32.mxu1 %vm277_vm3, %v245_v14  ;;  %v249_v22 = vld [vmem:[%s2977_s23 + $0x48] sm:$0xff]  ;;  %v250_v24 = vld [vmem:[%s2977_s23 + $0x50] sm:$0xff]  ;;  %v251_v26 = vld [vmem:[%s2977_s23 + $0x60] sm:$0xff]  ;;  %p2789_p5 = pnand %p2788_p3, %p2782_p0 }
  0x20   : > { %2411 = vmatprep.mubr.msk.f32.mxu0 %vm277_vm3, %v637_v15  ;;  %v641_v23 = vld [vmem:[%s2977_s23 + $0x49] sm:$0xff]  ;;  %v642_v25 = vld [vmem:[%s2977_s23 + $0x51] sm:$0xff]  ;;  %v643_v27 = vld [vmem:[%s2977_s23 + $0x61] sm:$0xff] }
  0x21   : > { %2360 = vmatmul.mubr.msk.f32.gmra.mrb[2].mxu1 %vm277_vm3, %v246_v16  ;;  %v252_v28 = vld [vmem:[%s2977_s23 + $0x68] sm:$0xff]  ;;  %v253_v30 = vld [vmem:[%s2977_s23 + $0x78] sm:$0xff]  ;;  %v254_v32 = vld [vmem:[%s2977_s23 + $0x80] sm:$0xff] }
  0x22   : > { %2412 = vmatmul.mubr.msk.f32.gmra.mrb[2].mxu0 %vm277_vm3, %v638_v17  ;;  %2362 = vmatprep.mubr.msk.f32.mxu1 %vm277_vm3, %v247_v18  ;;  %v644_v29 = vld [vmem:[%s2977_s23 + $0x69] sm:$0xff]  ;;  %v645_v31 = vld [vmem:[%s2977_s23 + $0x79] sm:$0xff]  ;;  %v646_v33 = vld [vmem:[%s2977_s23 + $0x81] sm:$0xff] }
  0x23   : > { %2414 = vmatprep.mubr.msk.f32.mxu0 %vm277_vm3, %v639_v19  ;;  %v255_v34 = vld [vmem:[%s2977_s23 + $0x90] sm:$0xff]  ;;  %v256_v36 = vld [vmem:[%s2977_s23 + $0x98] sm:$0xff]  ;;  %v257_v38 = vld [vmem:[%s2977_s23 + $0xa8] sm:$0xff] }
  0x24   : > { %v647_v35 = vld [vmem:[%s2977_s23 + $0x91] sm:$0xff]  ;;  %v648_v37 = vld [vmem:[%s2977_s23 + $0x99] sm:$0xff]  ;;  %v649_v39 = vld [vmem:[%s2977_s23 + $0xa9] sm:$0xff] }
  0x25   : > { %2363 = vmatmul.mubr.msk.f32.gmra.mrb[4].mxu1 %vm277_vm3, %v248_v20  ;;  %v258_v40 = vld [vmem:[%s2977_s23 + $0xb0] sm:$0xff]  ;;  %v259_v42 = vld [vmem:[%s2977_s23 + $0xc0] sm:$0xff]  ;;  %v260_v44 = vld [vmem:[%s2977_s23 + $0xc8] sm:$0xff] }
  0x26   : > { %2415 = vmatmul.mubr.msk.f32.gmra.mrb[4].mxu0 %vm277_vm3, %v640_v21  ;;  %2365 = vmatprep.mubr.msk.f32.mxu1 %vm277_vm3, %v249_v22  ;;  %v650_v41 = vld [vmem:[%s2977_s23 + $0xb1] sm:$0xff]  ;;  %v1090_v43 = vld [vmem:[%s2977_s23 + $0x2] sm:$0xff]  ;;  %v1092_v47 = vld [vmem:[%s2977_s23 + $0x1a] sm:$0xff] }
  0x27   : > { %2417 = vmatprep.mubr.msk.f32.mxu0 %vm277_vm3, %v641_v23  ;;  %v1091_v45 = vld [vmem:[%s2977_s23 + $0xa] sm:$0xff]  ;;  %v261_v46 = vld [vmem:[%s2977_s23 + $0xd8] sm:$0xff]  ;;  %v262_v48 = vld [vmem:[%s2977_s23 + $0xe0] sm:$0xff] }
  0x28   : > { %v1093_v49 = vld [vmem:[%s2977_s23 + $0x22] sm:$0xff]  ;;  %v263_v50 = vld [vmem:[%s2977_s23 + $0xf0] sm:$0xff]  ;;  %v264_v52 = vld [vmem:[%s2977_s23 + $0xf8] sm:$0xff] }
  0x29   : > { %2366 = vmatmul.mubr.msk.f32.gmra.mrb[6].mxu1 %vm277_vm3, %v250_v24  ;;  %v1094_v51 = vld [vmem:[%s2977_s23 + $0x32] sm:$0xff]  ;;  %v1095_v53 = vld [vmem:[%s2977_s23 + $0x3a] sm:$0xff]  ;;  %v265_v54 = vld [vmem:[%s2977_s23 + $0x108] sm:$0xff] }
  0x2a   : > { %2418 = vmatmul.mubr.msk.f32.gmra.mrb[6].mxu0 %vm277_vm3, %v642_v25  ;;  %2368 = vmatprep.mubr.msk.f32.mxu1 %vm277_vm3, %v251_v26  ;;  %v1096_v55 = vld [vmem:[%s2977_s23 + $0x4a] sm:$0xff]  ;;  %v1097_v57 = vld [vmem:[%s2977_s23 + $0x52] sm:$0xff]  ;;  %v267_v58 = vld [vmem:[%s2977_s23 + $0x120] sm:$0xff] }
  0x2b   : > { %2420 = vmatprep.mubr.msk.f32.mxu0 %vm277_vm3, %v643_v27  ;;  %v266_v56 = vld [vmem:[%s2977_s23 + $0x110] sm:$0xff]  ;;  %v1098_v59 = vld [vmem:[%s2977_s23 + $0x62] sm:$0xff]  ;;  %v269_v62 = vld [vmem:[%s2977_s23 + $0x138] sm:$0xff] }
  0x2c   : > { %v268_v60 = vld [vmem:[%s2977_s23 + $0x128] sm:$0xff]  ;;  %v1100_v63 = vld [vmem:[%s2977_s23 + $0x7a] sm:$0xff]  ;;  %v271_v2 = vld [vmem:[%s2977_s23 + $0x150] sm:$0xff] }
  0x2d   : > { %2369 = vmatmul.mubr.msk.f32.gmra.mrb[8].mxu1 %vm277_vm3, %v252_v28  ;;  %v1099_v61 = vld [vmem:[%s2977_s23 + $0x6a] sm:$0xff]  ;;  %v270_v0 = vld [vmem:[%s2977_s23 + $0x140] sm:$0xff]  ;;  %v1102_v3 = vld [vmem:[%s2977_s23 + $0x92] sm:$0xff] }
  0x2e   : > { %2421 = vmatmul.mubr.msk.f32.gmra.mrb[8].mxu0 %vm277_vm3, %v644_v29  ;;  %2371 = vmatprep.mubr.msk.f32.mxu1 %vm277_vm3, %v253_v30  ;;  %v1101_v1 = vld [vmem:[%s2977_s23 + $0x82] sm:$0xff]  ;;  %v272_v4 = vld [vmem:[%s2977_s23 + $0x158] sm:$0xff]  ;;  %v1104_v7 = vld [vmem:[%s2977_s23 + $0xaa] sm:$0xff] }
  0x2f   : > { %2423 = vmatprep.mubr.msk.f32.mxu0 %vm277_vm3, %v645_v31  ;;  %v1103_v5 = vld [vmem:[%s2977_s23 + $0x9a] sm:$0xff]  ;;  %v273_v6 = vld [vmem:[%s2977_s23 + $0x168] sm:$0xff]  ;;  %v274_v8 = vld [vmem:[%s2977_s23 + $0x170] sm:$0xff] }
  0x30   : > { %v1105_v9 = vld [vmem:[%s2977_s23 + $0xb2] sm:$0xff]  ;;  %v651_v10 = vld [vmem:[%s2977_s23 + $0xc1] sm:$0xff]  ;;  %v652_v12 = vld [vmem:[%s2977_s23 + $0xc9] sm:$0xff] }
  0x31   : > { %2372 = vmatmul.mubr.msk.f32.gmra.mrb[10].mxu1 %vm277_vm3, %v254_v32  ;;  %v1106_v11 = vld [vmem:[%s2977_s23 + $0xc2] sm:$0xff]  ;;  %v1107_v13 = vld [vmem:[%s2977_s23 + $0xca] sm:$0xff]  ;;  %v653_v14 = vld [vmem:[%s2977_s23 + $0xd9] sm:$0xff] }
  0x32   : > { %2424 = vmatmul.mubr.msk.f32.gmra.mrb[10].mxu0 %vm277_vm3, %v646_v33  ;;  %2374 = vmatprep.mubr.msk.f32.mxu1 %vm277_vm3, %v255_v34  ;;  %v1108_v15 = vld [vmem:[%s2977_s23 + $0xda] sm:$0xff]  ;;  %v1109_v17 = vld [vmem:[%s2977_s23 + $0xe2] sm:$0xff]  ;;  %v655_v18 = vld [vmem:[%s2977_s23 + $0xf1] sm:$0xff] }
  0x33   : > { %2426 = vmatprep.mubr.msk.f32.mxu0 %vm277_vm3, %v647_v35  ;;  %v654_v16 = vld [vmem:[%s2977_s23 + $0xe1] sm:$0xff]  ;;  %v1110_v19 = vld [vmem:[%s2977_s23 + $0xf2] sm:$0xff]  ;;  %v657_v22 = vld [vmem:[%s2977_s23 + $0x109] sm:$0xff] }
  0x34   : > { %v656_v20 = vld [vmem:[%s2977_s23 + $0xf9] sm:$0xff]  ;;  %v1112_v23 = vld [vmem:[%s2977_s23 + $0x10a] sm:$0xff]  ;;  %v659_v26 = vld [vmem:[%s2977_s23 + $0x121] sm:$0xff] }
  0x35   : > { %2375 = vmatmul.mubr.msk.f32.gmra.mrb[12].mxu1 %vm277_vm3, %v256_v36  ;;  %v1111_v21 = vld [vmem:[%s2977_s23 + $0xfa] sm:$0xff]  ;;  %v658_v24 = vld [vmem:[%s2977_s23 + $0x111] sm:$0xff]  ;;  %v1114_v27 = vld [vmem:[%s2977_s23 + $0x122] sm:$0xff] }
  0x36   : > { %2427 = vmatmul.mubr.msk.f32.gmra.mrb[12].mxu0 %vm277_vm3, %v648_v37  ;;  %2377 = vmatprep.mubr.msk.f32.mxu1 %vm277_vm3, %v257_v38  ;;  %v1113_v25 = vld [vmem:[%s2977_s23 + $0x112] sm:$0xff]  ;;  %v660_v28 = vld [vmem:[%s2977_s23 + $0x129] sm:$0xff]  ;;  %v1116_v31 = vld [vmem:[%s2977_s23 + $0x13a] sm:$0xff] }
  0x37   : > { %2429 = vmatprep.mubr.msk.f32.mxu0 %vm277_vm3, %v649_v39  ;;  %v1115_v29 = vld [vmem:[%s2977_s23 + $0x12a] sm:$0xff]  ;;  %v661_v30 = vld [vmem:[%s2977_s23 + $0x139] sm:$0xff]  ;;  %v662_v32 = vld [vmem:[%s2977_s23 + $0x141] sm:$0xff] }
  0x38   : > { %v1117_v33 = vld [vmem:[%s2977_s23 + $0x142] sm:$0xff]  ;;  %v663_v34 = vld [vmem:[%s2977_s23 + $0x151] sm:$0xff]  ;;  %v664_v36 = vld [vmem:[%s2977_s23 + $0x159] sm:$0xff] }
  0x39   : > { %2378 = vmatmul.mubr.msk.f32.gmra.mrb[14].mxu1 %vm277_vm3, %v258_v40  ;;  %v1118_v35 = vld [vmem:[%s2977_s23 + $0x152] sm:$0xff]  ;;  %v1119_v37 = vld [vmem:[%s2977_s23 + $0x15a] sm:$0xff]  ;;  %v665_v38 = vld [vmem:[%s2977_s23 + $0x169] sm:$0xff] }
  0x3a   : > { %2430 = vmatmul.mubr.msk.f32.gmra.mrb[14].mxu0 %vm277_vm3, %v650_v41  ;;  %2380 = vmatprep.mubr.msk.f32.mxu1 %vm277_vm3, %v259_v42  ;;  %v1120_v39 = vld [vmem:[%s2977_s23 + $0x16a] sm:$0xff]  ;;  %v1121_v41 = vld [vmem:[%s2977_s23 + $0x172] sm:$0xff] }
  0x3b   : > { %2460 = vmatprep.mubr.msk.f32.mxu0 %vm277_vm3, %v1090_v43  ;;  %v666_v40 = vld [vmem:[%s2977_s23 + $0x171] sm:$0xff] }
  0x3d   : > { %2381 = vmatmul.mubr.msk.f32.gmra.mrb[16].mxu1 %vm277_vm3, %v260_v44 }
  0x3e   : > { %2461 = vmatmul.mubr.msk.f32.vlgmr.msra.gmra.mrb[0].mxu0 %vm277_vm3, %v1091_v45  ;;  %2383 = vmatprep.mubr.msk.f32.mxu1 %vm277_vm3, %v261_v46 }
  0x3f   : > { %2463 = vmatprep.mubr.msk.f32.mxu0 %vm277_vm3, %v1092_v47 }
  0x41   : > { %2384 = vmatmul.mubr.msk.f32.gmra.mrb[18].mxu1 %vm277_vm3, %v262_v48 }
  0x42   : > { %2464 = vmatmul.mubr.msk.f32.gmra.mrb[2].mxu0 %vm277_vm3, %v1093_v49  ;;  %2386 = vmatprep.mubr.msk.f32.mxu1 %vm277_vm3, %v263_v50 }
  0x43   : > { %2466 = vmatprep.mubr.msk.f32.mxu0 %vm277_vm3, %v1094_v51 }
  0x45   : > { %2387 = vmatmul.mubr.msk.f32.gmra.mrb[20].mxu1 %vm277_vm3, %v264_v52 }
  0x46   : > { %2467 = vmatmul.mubr.msk.f32.gmra.mrb[4].mxu0 %vm277_vm3, %v1095_v53  ;;  %2389 = vmatprep.mubr.msk.f32.mxu1 %vm277_vm3, %v265_v54 }
  0x47   : > { %2469 = vmatprep.mubr.msk.f32.mxu0 %vm277_vm3, %v1096_v55 }
  0x49   : > { %2390 = vmatmul.mubr.msk.f32.gmra.mrb[22].mxu1 %vm277_vm3, %v266_v56 }
  0x4a   : > { %2470 = vmatmul.mubr.msk.f32.gmra.mrb[6].mxu0 %vm277_vm3, %v1097_v57  ;;  %2392 = vmatprep.mubr.msk.f32.mxu1 %vm277_vm3, %v267_v58 }
  0x4b   : > { %2472 = vmatprep.mubr.msk.f32.mxu0 %vm277_vm3, %v1098_v59  ;;  %v3190_v59 = vld [vmem:[%s3735_s2] ss:$0 sm:$0xff] }
  0x4d   : > { %2393 = vmatmul.mubr.msk.f32.gmra.mrb[24].mxu1 %vm277_vm3, %v268_v60 }
  0x4e   : > { %2473 = vmatmul.mubr.msk.f32.gmra.mrb[8].mxu0 %vm277_vm3, %v1099_v61  ;;  %2395 = vmatprep.mubr.msk.f32.mxu1 %vm277_vm3, %v269_v62 }
  0x4f   : > { %2475 = vmatprep.mubr.msk.f32.mxu0 %vm277_vm3, %v1100_v63 }
  0x51   : > { %2396 = vmatmul.mubr.msk.f32.gmra.mrb[26].mxu1 %vm277_vm3, %v270_v0 }
  0x52   : > { %2476 = vmatmul.mubr.msk.f32.gmra.mrb[10].mxu0 %vm277_vm3, %v1101_v1  ;;  %2398 = vmatprep.mubr.msk.f32.mxu1 %vm277_vm3, %v271_v2 }
  0x53   : > { %2478 = vmatprep.mubr.msk.f32.mxu0 %vm277_vm3, %v1102_v3 }
  0x55   : > { %2399 = vmatmul.mubr.msk.f32.gmra.mrb[28].mxu1 %vm277_vm3, %v272_v4 }
  0x56   : > { %2479 = vmatmul.mubr.msk.f32.gmra.mrb[12].mxu0 %vm277_vm3, %v1103_v5  ;;  %2401 = vmatprep.mubr.msk.f32.mxu1 %vm277_vm3, %v273_v6 }
  0x57   : > { %2481 = vmatprep.mubr.msk.f32.mxu0 %vm277_vm3, %v1104_v7 }
  0x59   : > { %2402 = vmatmul.mubr.msk.f32.gmra.mrb[30].mxu1 %vm277_vm3, %v274_v8 }
  0x5a   : > { %2482 = vmatmul.mubr.msk.f32.gmra.mrb[14].mxu0 %vm277_vm3, %v1105_v9  ;;  %2432 = vmatprep.mubr.msk.f32.mxu1 %vm277_vm3, %v651_v10 }
  0x5b   : > { %2484 = vmatprep.mubr.msk.f32.mxu0 %vm277_vm3, %v1106_v11 }
  0x5d   : > { %2433 = vmatmul.mubr.msk.f32.vlgmr.msra.gmra.mrb[16].mxu1 %vm277_vm3, %v652_v12 }
  0x5e   : > { %2485 = vmatmul.mubr.msk.f32.gmra.mrb[16].mxu0 %vm277_vm3, %v1107_v13  ;;  %2435 = vmatprep.mubr.msk.f32.mxu1 %vm277_vm3, %v653_v14 }
  0x5f   : > { %2487 = vmatprep.mubr.msk.f32.mxu0 %vm277_vm3, %v1108_v15 }
  0x61   : > { %2436 = vmatmul.mubr.msk.f32.gmra.mrb[18].mxu1 %vm277_vm3, %v654_v16 }
  0x62   : > { %2488 = vmatmul.mubr.msk.f32.gmra.mrb[18].mxu0 %vm277_vm3, %v1109_v17  ;;  %2438 = vmatprep.mubr.msk.f32.mxu1 %vm277_vm3, %v655_v18 }
  0x63   : > { %2490 = vmatprep.mubr.msk.f32.mxu0 %vm277_vm3, %v1110_v19 }
  0x65   : > { %2439 = vmatmul.mubr.msk.f32.gmra.mrb[20].mxu1 %vm277_vm3, %v656_v20 }
  0x66   : > { %2491 = vmatmul.mubr.msk.f32.gmra.mrb[20].mxu0 %vm277_vm3, %v1111_v21  ;;  %2441 = vmatprep.mubr.msk.f32.mxu1 %vm277_vm3, %v657_v22 }
  0x67   : > { %2493 = vmatprep.mubr.msk.f32.mxu0 %vm277_vm3, %v1112_v23 }
  0x69   : > { %2442 = vmatmul.mubr.msk.f32.gmra.mrb[22].mxu1 %vm277_vm3, %v658_v24 }
  0x6a   : > { %2494 = vmatmul.mubr.msk.f32.gmra.mrb[22].mxu0 %vm277_vm3, %v1113_v25  ;;  %2444 = vmatprep.mubr.msk.f32.mxu1 %vm277_vm3, %v659_v26 }
  0x6b   : > { %2496 = vmatprep.mubr.msk.f32.mxu0 %vm277_vm3, %v1114_v27 }
  0x6d   : > { %2445 = vmatmul.mubr.msk.f32.gmra.mrb[24].mxu1 %vm277_vm3, %v660_v28 }
  0x6e   : > { %2497 = vmatmul.mubr.msk.f32.gmra.mrb[24].mxu0 %vm277_vm3, %v1115_v29  ;;  %2447 = vmatprep.mubr.msk.f32.mxu1 %vm277_vm3, %v661_v30 }
  0x6f   : > { %2499 = vmatprep.mubr.msk.f32.mxu0 %vm277_vm3, %v1116_v31 }
  0x71   : > { %2448 = vmatmul.mubr.msk.f32.gmra.mrb[26].mxu1 %vm277_vm3, %v662_v32 }
  0x72   : > { %2500 = vmatmul.mubr.msk.f32.gmra.mrb[26].mxu0 %vm277_vm3, %v1117_v33  ;;  %2450 = vmatprep.mubr.msk.f32.mxu1 %vm277_vm3, %v663_v34 }
  0x73   : > { %2502 = vmatprep.mubr.msk.f32.mxu0 %vm277_vm3, %v1118_v35 }
  0x75   : > { %2451 = vmatmul.mubr.msk.f32.gmra.mrb[28].mxu1 %vm277_vm3, %v664_v36 }
  0x76   : > { %2503 = vmatmul.mubr.msk.f32.gmra.mrb[28].mxu0 %vm277_vm3, %v1119_v37  ;;  %2453 = vmatprep.mubr.msk.f32.mxu1 %vm277_vm3, %v665_v38 }
  0x77   : > { %2505 = vmatprep.mubr.msk.f32.mxu0 %vm277_vm3, %v1120_v39 }
  0x79   : > { %2454 = vmatmul.mubr.msk.f32.gmra.mrb[30].mxu1 %vm277_vm3, %v666_v40 }
  0x7a   : > { %2506 = vmatmul.mubr.msk.f32.gmra.mrb[30].mxu0 %vm277_vm3, %v1121_v41 }
  0xf0   : > { %v2358_v42 = vpop.f32.mrb[0].mxu1 }
  0xf1   : > { %v444_v43 = vpop.f32.mrb[1].mxu1 }
  0xf4   : > { %v2361_v44 = vpop.f32.mrb[2].mxu1 }
  0xf5   : > { %v454_v45 = vpop.f32.mrb[3].mxu1 }
  0xf8   : > { %v2364_v46 = vpop.f32.mrb[4].mxu1 }
  0xf9   : > { %v464_v47 = vpop.f32.mrb[5].mxu1 }
  0xfc   : > { %v2367_v48 = vpop.f32.mrb[6].mxu1 }
  0xfd   : > { %v474_v49 = vpop.f32.mrb[7].mxu1 }
 0x100   : > { %v2370_v50 = vpop.f32.mrb[8].mxu1 }
 0x101   : > { %v484_v51 = vpop.f32.mrb[9].mxu1 }
 0x104   : > { %v3175_v52 = vpop.f32.mrb[10].mxu1 }
 0x105   : > { %v3177_v53 = vpop.f32.mrb[11].mxu1 }
 0x108   : > { %v3179_v54 = vpop.f32.mrb[12].mxu1 }
 0x109   : > { %v3181_v55 = vpop.f32.mrb[13].mxu1 }
 0x10c   : > { %v3183_v56 = vpop.f32.mrb[14].mxu1 }
 0x10d   : > { %v3185_v57 = vpop.f32.mrb[15].mxu1 }
 0x111   : > { %v2462_v58 = vpop.f32.mrb[0].mxu0 }
 0x112   : > { %v2528_v60 = vadd.f32 %v2462_v58, %v2358_v42  ;;  %v1290_v61 = vpop.f32.mrb[1].mxu0 }
 0x113   : > { %v2529_v62 = vadd.f32 %v1290_v61, %v444_v43 }
 0x114   : > { %v3193_v63 = vadd.f32 %v2528_v60, %v3190_v59 }
 0x115   : > { %v3196_v0 = vadd.f32 %v2529_v62, %v3190_v59  ;;  %v2465_v1 = vpop.f32.mrb[2].mxu0 }
 0x116   : > { %v1617_v2 = vmin.f32 %v3193_v63, 20.0  ;;  %v2530_v3 = vadd.f32 %v2465_v1, %v2361_v44  ;;  %v1300_v4 = vpop.f32.mrb[3].mxu0  ;;  %vm1905_vm4 = vcmp.gt.f32.partialorder %v3193_v63, 20.0 }
 0x117   : > { %v1616_v5 = vmin.f32 %v3196_v0, 20.0  ;;  %v2531_v6 = vadd.f32 %v1300_v4, %v454_v45  ;;  %vm1904_vm5 = vcmp.gt.f32.partialorder %v3196_v0, 20.0 }
 0x118   : > { %v1650_v7 = vmul.f32 1.442695, %v1617_v2  ;;  %v3201_v8 = vadd.f32 %v2530_v3, %v3190_v59 }
 0x119   : > { %v1648_v9 = vmul.f32 1.442695, %v1616_v5  ;;  %v3204_v10 = vadd.f32 %v2531_v6, %v3190_v59  ;;  %v2468_v11 = vpop.f32.mrb[4].mxu0 }
 0x11a   : > { %2651 = vpow2.f32 %v1650_v7  ;;  %v1619_v12 = vmin.f32 %v3201_v8, 20.0  ;;  %v2532_v13 = vadd.f32 %v2468_v11, %v2364_v46  ;;  %v1310_v14 = vpop.f32.mrb[5].mxu0  ;;  %vm1907_vm6 = vcmp.gt.f32.partialorder %v3201_v8, 20.0 }
 0x11b   : > { %2653 = vpow2.f32 %v1648_v9  ;;  %v1618_v15 = vmin.f32 %v3204_v10, 20.0  ;;  %v2533_v16 = vadd.f32 %v1310_v14, %v464_v47  ;;  %vm1906_vm7 = vcmp.gt.f32.partialorder %v3204_v10, 20.0 }
 0x11c   : > { %v1654_v17 = vmul.f32 1.442695, %v1619_v12  ;;  %v3209_v18 = vadd.f32 %v2532_v13, %v3190_v59 }
 0x11d   : > { %v1652_v19 = vmul.f32 1.442695, %v1618_v15  ;;  %v3212_v20 = vadd.f32 %v2533_v16, %v3190_v59  ;;  %v2471_v21 = vpop.f32.mrb[6].mxu0 }
 0x11e   : > { %2655 = vpow2.f32 %v1654_v17  ;;  %v1621_v22 = vmin.f32 %v3209_v18, 20.0  ;;  %v2534_v23 = vadd.f32 %v2471_v21, %v2367_v48  ;;  %v1320_v24 = vpop.f32.mrb[7].mxu0  ;;  %vm1909_vm8 = vcmp.gt.f32.partialorder %v3209_v18, 20.0 }
 0x11f   : > { %2657 = vpow2.f32 %v1652_v19  ;;  %v1620_v25 = vmin.f32 %v3212_v20, 20.0  ;;  %v2535_v26 = vadd.f32 %v1320_v24, %v474_v49  ;;  %vm1908_vm9 = vcmp.gt.f32.partialorder %v3212_v20, 20.0 }
 0x120   : > { %v1658_v27 = vmul.f32 1.442695, %v1621_v22  ;;  %v3217_v28 = vadd.f32 %v2534_v23, %v3190_v59 }
 0x121   : > { %v1656_v29 = vmul.f32 1.442695, %v1620_v25  ;;  %v3220_v30 = vadd.f32 %v2535_v26, %v3190_v59  ;;  %v2474_v31 = vpop.f32.mrb[8].mxu0 }
 0x122   : > { %2659 = vpow2.f32 %v1658_v27  ;;  %v1623_v32 = vmin.f32 %v3217_v28, 20.0  ;;  %v2536_v33 = vadd.f32 %v2474_v31, %v2370_v50  ;;  %v1330_v34 = vpop.f32.mrb[9].mxu0  ;;  %vm1911_vm10 = vcmp.gt.f32.partialorder %v3217_v28, 20.0 }
 0x123   : > { %2661 = vpow2.f32 %v1656_v29  ;;  %v1622_v35 = vmin.f32 %v3220_v30, 20.0  ;;  %v2537_v36 = vadd.f32 %v1330_v34, %v484_v51  ;;  %vm1910_vm11 = vcmp.gt.f32.partialorder %v3220_v30, 20.0 }
 0x124   : > { %v2652_v37 = vpop.eup %2651  ;;  %v1662_v38 = vmul.f32 1.442695, %v1623_v32  ;;  %v3225_v39 = vadd.f32 %v2536_v33, %v3190_v59 }
 0x125   : > { %v2654_v40 = vpop.eup %2653  ;;  %v1713_v41 = vadd.f32 2.0, %v2652_v37  ;;  %v1660_v42 = vmul.f32 1.442695, %v1622_v35  ;;  %v3228_v43 = vadd.f32 %v2537_v36, %v3190_v59  ;;  %v2477_v44 = vpop.f32.mrb[10].mxu0 }
 0x126   : > { %v1712_v45 = vadd.f32 2.0, %v2654_v40  ;;  %2663 = vpow2.f32 %v1662_v38  ;;  %v1625_v46 = vmin.f32 %v3225_v39, 20.0  ;;  %v1340_v47 = vpop.f32.mrb[11].mxu0  ;;  %v2538_v60 = vadd.f32 %v2477_v44, %v3175_v52 }
 0x127   : > { %v3231_v48 = vmul.f32 %v2652_v37, %v1713_v41  ;;  %2665 = vpow2.f32 %v1660_v42  ;;  %v1624_v49 = vmin.f32 %v3228_v43, 20.0  ;;  %v2539_v61 = vadd.f32 %v1340_v47, %v3177_v53 }
 0x128   : > { %v2656_v50 = vpop.eup %2655  ;;  %v3234_v51 = vmul.f32 %v2654_v40, %v1712_v45  ;;  %v1666_v58 = vmul.f32 1.442695, %v1625_v46  ;;  %v3241_v7 = vadd.f32 %v2538_v60, %v3190_v59  ;;  %vm1913_vm12 = vcmp.gt.f32.partialorder %v3225_v39, 20.0 }
 0x129   : > { %v2658_v62 = vpop.eup %2657  ;;  %v1777_v1 = vadd.f32 2.0, %v3231_v48  ;;  %v1715_v2 = vadd.f32 2.0, %v2656_v50  ;;  %v1664_v3 = vmul.f32 1.442695, %v1624_v49  ;;  %v2480_v4 = vpop.f32.mrb[12].mxu0  ;;  %v3246_v52 = vadd.f32 %v2539_v61, %v3190_v59 }
 0x12a   : > { %v1776_v5 = vadd.f32 2.0, %v3234_v51  ;;  %v1714_v6 = vadd.f32 2.0, %v2658_v62  ;;  %2667 = vpow2.f32 %v1666_v58  ;;  %v1350_v9 = vpop.f32.mrb[13].mxu0  ;;  %v2540_v53 = vadd.f32 %v2480_v4, %v3179_v54 }
 0x12b   : > { %2669 = vrcp.f32 %v1777_v1  ;;  %v3243_v11 = vmul.f32 %v2656_v50, %v1715_v2  ;;  %v1627_v14 = vmin.f32 %v3241_v7, 20.0  ;;  %v1626_v19 = vmin.f32 %v3246_v52, 20.0 }
 0x12c   : > { %v2660_v12 = vpop.eup %2659  ;;  %2671 = vrcp.f32 %v1776_v5  ;;  %v3249_v13 = vmul.f32 %v2658_v62, %v1714_v6  ;;  %v3258_v27 = vadd.f32 %v2540_v53, %v3190_v59  ;;  %v2541_v32 = vadd.f32 %v1350_v9, %v3181_v55 }
 0x12d   : > { %v2662_v15 = vpop.eup %2661  ;;  %v1779_v16 = vadd.f32 2.0, %v3243_v11  ;;  %v1717_v17 = vadd.f32 2.0, %v2660_v12  ;;  %2673 = vpow2.f32 %v1664_v3  ;;  %v2483_v21 = vpop.f32.mrb[14].mxu0  ;;  %v1670_v24 = vmul.f32 1.442695, %v1627_v14 }
 0x12e   : > { %v1778_v22 = vadd.f32 2.0, %v3249_v13  ;;  %v1716_v23 = vadd.f32 2.0, %v2662_v15  ;;  %v1360_v25 = vpop.f32.mrb[15].mxu0  ;;  %v1668_v26 = vmul.f32 1.442695, %v1626_v19  ;;  %v2542_v33 = vadd.f32 %v2483_v21, %v3183_v56 }
 0x12f   : > { %2675 = vrcp.f32 %v1779_v16  ;;  %v3255_v54 = vmul.f32 %v2660_v12, %v1717_v17  ;;  %v1629_v37 = vmin.f32 %v3258_v27, 20.0  ;;  %v3281_v46 = vadd.f32 %v2541_v32, %v3190_v59 }
 0x130   : > { %v2664_v29 = vpop.eup %2663  ;;  %2677 = vrcp.f32 %v1778_v22  ;;  %v3260_v31 = vmul.f32 %v2662_v15, %v1716_v23  ;;  %v3267_v38 = vpop.f32.mrb[16].mxu1  ;;  %v3286_v50 = vadd.f32 %v2542_v33, %v3190_v59  ;;  %v2543_v58 = vadd.f32 %v1360_v25, %v3185_v57 }
 0x131   : > { %v2666_v34 = vpop.eup %2665  ;;  %v1781_v35 = vadd.f32 2.0, %v3255_v54  ;;  %v1719_v36 = vadd.f32 2.0, %v2664_v29  ;;  %2679 = vpow2.f32 %v1670_v24  ;;  %v3269_v40 = vpop.f32.mrb[16].mxu0  ;;  %v1674_v45 = vmul.f32 1.442695, %v1629_v37 }
 0x132   : > { %v1780_v55 = vadd.f32 2.0, %v3260_v31  ;;  %v1718_v56 = vadd.f32 2.0, %v2666_v34  ;;  %2681 = vpow2.f32 %v1668_v26  ;;  %v3274_v41 = vpop.f32.mrb[17].mxu1  ;;  %v3276_v42 = vpop.f32.mrb[17].mxu0  ;;  %v1628_v1 = vmin.f32 %v3281_v46, 20.0 }
 0x133   : > { %2683 = vrcp.f32 %v1781_v35  ;;  %v3278_v44 = vmul.f32 %v2664_v29, %v1719_v36  ;;  %v1631_v6 = vmin.f32 %v3286_v50, 20.0  ;;  %v3339_v36 = vadd.f32 %v2543_v58, %v3190_v59 }
 0x134   : > { %v2668_v47 = vpop.eup %2667  ;;  %2685 = vrcp.f32 %v1780_v55  ;;  %v3283_v49 = vmul.f32 %v2666_v34, %v1718_v56  ;;  %v3296_v2 = vpop.f32.mrb[18].mxu1  ;;  %v1672_v16 = vmul.f32 1.442695, %v1628_v1  ;;  %vm1912_vm13 = vcmp.gt.f32.partialorder %v3228_v43, 20.0 }
 0x135   : > { %v2670_v60 = vpop.eup %2669  ;;  %v1783_v61 = vadd.f32 2.0, %v3278_v44  ;;  %v1721_v62 = vadd.f32 2.0, %v2668_v47  ;;  %2687 = vpow2.f32 %v1674_v45  ;;  %v3298_v3 = vpop.f32.mrb[18].mxu0  ;;  %v1678_v19 = vmul.f32 1.442695, %v1631_v6 }
 0x136   : > { %v2672_v4 = vpop.eup %2671  ;;  %v1811_v5 = vmul.f32 %v2670_v60, %v3231_v48  ;;  %v1782_v57 = vadd.f32 2.0, %v3283_v49  ;;  %v3304_v9 = vpop.f32.mrb[19].mxu1  ;;  %v1630_v58 = vmin.f32 %v3339_v36, 20.0  ;;  %vm1915_vm14 = vcmp.gt.f32.partialorder %v3241_v7, 20.0 }
 0x137   : > { %v3306_v53 = vpop.f32.mrb[19].mxu0  ;;  %v2674_v12 = vpop.eup %2673  ;;  %v1809_v14 = vmul.f32 %v2672_v4, %v3234_v51  ;;  %2689 = vrcp.f32 %v1783_v61  ;;  %v3309_v15 = vmul.f32 %v2668_v47, %v1721_v62  ;;  %v2544_v47 = vadd.f32 %v3269_v40, %v3267_v38 }
 0x138   : > { %v1873_v17 = vmul.f32 %v1811_v5, %v3193_v63  ;;  %2691 = vrcp.f32 %v1782_v57  ;;  %v1720_v48 = vadd.f32 2.0, %v2674_v12  ;;  %v3315_v24 = vpop.f32.mrb[20].mxu1  ;;  %vm1914_vm15 = vcmp.gt.f32.partialorder %v3246_v52, 20.0 }
 0x139   : > { %v2676_v21 = vpop.eup %2675  ;;  %v1872_v22 = vmul.f32 %v1809_v14, %v3196_v0  ;;  %v1785_v23 = vadd.f32 2.0, %v3309_v15  ;;  %2693 = vpow2.f32 %v1672_v16  ;;  %v3317_v51 = vpop.f32.mrb[20].mxu0  ;;  %vm1917_vm0 = vcmp.gt.f32.partialorder %v3258_v27, 20.0 }
 0x13a   : > { %v2678_v25 = vpop.eup %2677  ;;  %v1937_v26 = vsel %vm1905_vm4, %v3193_v63, %v1873_v17  ;;  %v1815_v29 = vmul.f32 %v2676_v21, %v3243_v11  ;;  %v3324_v32 = vmul.f32 %v2674_v12, %v1720_v48  ;;  %2695 = vpow2.f32 %v1678_v19  ;;  %v3326_v33 = vpop.f32.mrb[21].mxu1 }
 0x13b   : > { %v3328_v34 = vpop.f32.mrb[21].mxu0  ;;  %v2680_v35 = vpop.eup %2679  ;;  %1969 = vst [vmem:[%s3331_s30 + $0x8] sm:$0xff] %v1937_v26  ;;  %v1936_v63 = vsel %vm1904_vm5, %v3196_v0, %v1872_v22  ;;  %v1813_v11 = vmul.f32 %v2678_v25, %v3249_v13  ;;  %2697 = vrcp.f32 %v1785_v23  ;;  %v3374_v19 = vadd.f32 %v2544_v47, %v3190_v59 }
 0x13c   : > { %v2682_v37 = vpop.eup %2681  ;;  %1968 = vst [vmem:[%s3331_s30] sm:$0xff] %v1936_v63  ;;  %v1875_v55 = vmul.f32 %v1815_v29, %v3201_v8  ;;  %v1784_v56 = vadd.f32 2.0, %v3324_v32  ;;  %v1723_v45 = vadd.f32 2.0, %v2680_v35  ;;  %v3349_v61 = vpop.f32.mrb[22].mxu1  ;;  %vm1916_vm1 = vcmp.gt.f32.partialorder %v3281_v46, 20.0 }
 0x13d   : > { %v2684_v60 = vpop.eup %2683  ;;  %v1874_v0 = vmul.f32 %v1813_v11, %v3204_v10  ;;  %v1722_v13 = vadd.f32 2.0, %v2682_v37  ;;  %v3351_v62 = vpop.f32.mrb[22].mxu0  ;;  %vm1919_vm2 = vcmp.gt.f32.partialorder %v3286_v50, 20.0  ;;  %vm1918_vm3 = vcmp.gt.f32.partialorder %v3339_v36, 20.0 }
 0x13e   : > { %v2686_v1 = vpop.eup %2685  ;;  %v1939_v4 = vsel %vm1907_vm6, %v3201_v8, %v1875_v55  ;;  %v1819_v38 = vmul.f32 %v2684_v60, %v3255_v54  ;;  %2699 = vrcp.f32 %v1784_v56  ;;  %v3357_v40 = vmul.f32 %v2680_v35, %v1723_v45  ;;  %v3359_v5 = vpop.f32.mrb[23].mxu1 }
 0x13f   : > { %v3361_v57 = vpop.f32.mrb[23].mxu0  ;;  %v2688_v6 = vpop.eup %2687  ;;  %1971 = vst [vmem:[%s3331_s30 + $0x18] sm:$0xff] %v1939_v4  ;;  %v1938_v12 = vsel %vm1906_vm7, %v3204_v10, %v1874_v0  ;;  %v1817_v14 = vmul.f32 %v2686_v1, %v3260_v31  ;;  %v3368_v16 = vmul.f32 %v2682_v37, %v1722_v13  ;;  %v1676_v8 = vmul.f32 1.442695, %v1630_v58 }
 0x140   : > { %1970 = vst [vmem:[%s3331_s30 + $0x10] sm:$0xff] %v1938_v12  ;;  %v1877_v54 = vmul.f32 %v1819_v38, %v3209_v18  ;;  %v1787_v17 = vadd.f32 2.0, %v3357_v40  ;;  %v1725_v48 = vadd.f32 2.0, %v2688_v6  ;;  %v2545_v31 = vadd.f32 %v3276_v42, %v3274_v41  ;;  %v3380_v23 = vpop.f32.mrb[24].mxu1 }
 0x141   : > { %v2690_v21 = vpop.eup %2689  ;;  %v1876_v22 = vmul.f32 %v1817_v14, %v3212_v20  ;;  %v1786_v10 = vadd.f32 2.0, %v3368_v16  ;;  %2701 = vpow2.f32 %v1676_v8  ;;  %v3382_v25 = vpop.f32.mrb[24].mxu0  ;;  %vm1921_vm4 = vcmp.gt.f32.partialorder %v3374_v19, 20.0 }
 0x142   : > { %v2692_v26 = vpop.eup %2691  ;;  %v1941_v29 = vsel %vm1909_vm8, %v3209_v18, %v1877_v54  ;;  %v1823_v35 = vmul.f32 %v2690_v21, %v3278_v44  ;;  %2703 = vrcp.f32 %v1787_v17  ;;  %v3388_v63 = vmul.f32 %v2688_v6, %v1725_v48  ;;  %v3390_v11 = vpop.f32.mrb[25].mxu1 }
 0x143   : > { %v3392_v37 = vpop.f32.mrb[25].mxu0  ;;  %v2694_v41 = vpop.eup %2693  ;;  %1973 = vst [vmem:[%s3331_s30 + $0x28] sm:$0xff] %v1941_v29  ;;  %v1940_v42 = vsel %vm1908_vm9, %v3212_v20, %v1876_v22  ;;  %v1821_v55 = vmul.f32 %v2692_v26, %v3283_v49  ;;  %2705 = vrcp.f32 %v1786_v10  ;;  %v1633_v18 = vmin.f32 %v3374_v19, 20.0 }
 0x144   : > { %v2696_v56 = vpop.eup %2695  ;;  %1972 = vst [vmem:[%s3331_s30 + $0x20] sm:$0xff] %v1940_v42  ;;  %v1879_v44 = vmul.f32 %v1823_v35, %v3217_v28  ;;  %v1789_v45 = vadd.f32 2.0, %v3388_v63  ;;  %v1724_v47 = vadd.f32 2.0, %v2694_v41  ;;  %v3406_v49 = vadd.f32 %v2545_v31, %v3190_v59  ;;  %v3408_v58 = vpop.f32.mrb[26].mxu1 }
 0x145   : > { %v2698_v60 = vpop.eup %2697  ;;  %v1878_v0 = vmul.f32 %v1821_v55, %v3220_v30  ;;  %v1727_v13 = vadd.f32 2.0, %v2696_v56  ;;  %v1682_v20 = vmul.f32 1.442695, %v1633_v18  ;;  %v3410_v1 = vpop.f32.mrb[26].mxu0  ;;  %v2546_v21 = vadd.f32 %v3298_v3, %v3296_v2 }
 0x146   : > { %v1943_v4 = vsel %vm1911_vm10, %v3217_v28, %v1879_v44  ;;  %v1827_v38 = vmul.f32 %v2698_v60, %v3309_v15  ;;  %2707 = vrcp.f32 %v1789_v45  ;;  %v3416_v6 = vmul.f32 %v2694_v41, %v1724_v47  ;;  %v3418_v12 = vpop.f32.mrb[27].mxu1  ;;  %v3420_v14 = vpop.f32.mrb[27].mxu0 }
 0x147   : > { %1975 = vst [vmem:[%s3331_s30 + $0x38] sm:$0xff] %v1943_v4  ;;  %v1942_v8 = vsel %vm1910_vm11, %v3220_v30, %v1878_v0  ;;  %v3426_v54 = vmul.f32 %v2696_v56, %v1727_v13  ;;  %2709 = vpow2.f32 %v1682_v20  ;;  %v1632_v17 = vmin.f32 %v3406_v49, 20.0 }
 0x148   : > { %v2700_v28 = vpop.eup %2699  ;;  %1974 = vst [vmem:[%s3331_s30 + $0x30] sm:$0xff] %v1942_v8  ;;  %v1881_v15 = vmul.f32 %v1827_v38, %v3225_v39  ;;  %v1788_v48 = vadd.f32 2.0, %v3416_v6  ;;  %v2547_v31 = vadd.f32 %v3306_v53, %v3304_v9  ;;  %v3439_v26 = vpop.f32.mrb[28].mxu1  ;;  %v3445_v41 = vadd.f32 %v2546_v21, %v3190_v59 }
 0x149   : > { %v1825_v22 = vmul.f32 %v2700_v28, %v3324_v32  ;;  %v1791_v30 = vadd.f32 2.0, %v3426_v54  ;;  %v1680_v10 = vmul.f32 1.442695, %v1632_v17  ;;  %v3441_v29 = vpop.f32.mrb[28].mxu0  ;;  %v2548_v2 = vadd.f32 %v3317_v51, %v3315_v24  ;;  %v3449_v3 = vpop.f32.mrb[29].mxu1 }
 0x14a   : > { %v1945_v35 = vsel %vm1913_vm12, %v3225_v39, %v1881_v15  ;;  %2711 = vrcp.f32 %v1788_v48  ;;  %v3451_v32 = vpop.f32.mrb[29].mxu0  ;;  %v3456_v53 = vadd.f32 %v2547_v31, %v3190_v59  ;;  %v2549_v39 = vadd.f32 %v3328_v34, %v3326_v33 }
 0x14b   : > { %v2702_v42 = vpop.eup %2701  ;;  %1977 = vst [vmem:[%s3331_s30 + $0x48] sm:$0xff] %v1945_v35  ;;  %v1880_v9 = vmul.f32 %v1825_v22, %v3228_v43  ;;  %2713 = vrcp.f32 %v1791_v30  ;;  %v1635_v51 = vmin.f32 %v3445_v41, 20.0  ;;  %v3475_v13 = vadd.f32 %v2548_v2, %v3190_v59 }
 0x14c   : > { %v2704_v55 = vpop.eup %2703  ;;  %v1726_v24 = vadd.f32 2.0, %v2702_v42  ;;  %2715 = vpow2.f32 %v1680_v10  ;;  %v1634_v45 = vmin.f32 %v3456_v53, 20.0  ;;  %v3466_v47 = vpop.f32.mrb[30].mxu1  ;;  %v3483_v38 = vadd.f32 %v2549_v39, %v3190_v59 }
 0x14d   : > { %v2706_v18 = vpop.eup %2705  ;;  %v1944_v56 = vsel %vm1912_vm13, %v3228_v43, %v1880_v9  ;;  %v1831_v44 = vmul.f32 %v2704_v55, %v3357_v40  ;;  %v3468_v60 = vpop.f32.mrb[30].mxu0  ;;  %v1686_v0 = vmul.f32 1.442695, %v1635_v51  ;;  %v1637_v15 = vmin.f32 %v3475_v13, 20.0 }
 0x14e   : > { %1976 = vst [vmem:[%s3331_s30 + $0x40] sm:$0xff] %v1944_v56  ;;  %v1829_v33 = vmul.f32 %v2706_v18, %v3368_v16  ;;  %v3472_v34 = vmul.f32 %v2702_v42, %v1726_v24  ;;  %v3477_v43 = vpop.f32.mrb[31].mxu1  ;;  %v3479_v40 = vpop.f32.mrb[31].mxu0  ;;  %v1684_v4 = vmul.f32 1.442695, %v1634_v45  ;;  %v2550_v16 = vadd.f32 %v3351_v62, %v3349_v61 }
 0x14f   : > { %v1883_v20 = vmul.f32 %v1831_v44, %v3241_v7  ;;  %2717 = vpow2.f32 %v1686_v0  ;;  %v1690_v30 = vmul.f32 1.442695, %v1637_v15  ;;  %v1636_v31 = vmin.f32 %v3483_v38, 20.0 }
 0x150   : > { %v2708_v8 = vpop.eup %2707  ;;  %v1882_v17 = vmul.f32 %v1829_v33, %v3246_v52  ;;  %v1790_v28 = vadd.f32 2.0, %v3472_v34  ;;  %2719 = vpow2.f32 %v1684_v4  ;;  %v2552_v2 = vadd.f32 %v3382_v25, %v3380_v23 }
 0x151   : > { %v2710_v48 = vpop.eup %2709  ;;  %v1947_v21 = vsel %vm1915_vm14, %v3241_v7, %v1883_v20  ;;  %v1835_v22 = vmul.f32 %v2708_v8, %v3388_v63  ;;  %v3502_v7 = vadd.f32 %v2550_v16, %v3190_v59  ;;  %v1688_v55 = vmul.f32 1.442695, %v1636_v31 }
 0x152   : > { %1979 = vst [vmem:[%s3331_s30 + $0x58] sm:$0xff] %v1947_v21  ;;  %v1946_v61 = vsel %vm1914_vm15, %v3246_v52, %v1882_v17  ;;  %2721 = vrcp.f32 %v1790_v28  ;;  %v1729_v62 = vadd.f32 2.0, %v2710_v48  ;;  %v2551_v52 = vadd.f32 %v3361_v57, %v3359_v5 }
 0x153   : > { %1978 = vst [vmem:[%s3331_s30 + $0x50] sm:$0xff] %v1946_v61  ;;  %v1885_v10 = vmul.f32 %v1835_v22, %v3258_v27  ;;  %2723 = vpow2.f32 %v1690_v30  ;;  %v1639_v24 = vmin.f32 %v3502_v7, 20.0  ;;  %v3528_v45 = vadd.f32 %v2552_v2, %v3190_v59 }
 0x154   : > { %v2712_v35 = vpop.eup %2711  ;;  %v3504_v63 = vmul.f32 %v2710_v48, %v1729_v62  ;;  %v3518_v57 = vadd.f32 %v2551_v52, %v3190_v59  ;;  %2725 = vpow2.f32 %v1688_v55  ;;  %v2553_v4 = vadd.f32 %v3392_v37, %v3390_v11 }
 0x155   : > { %v2714_v42 = vpop.eup %2713  ;;  %v1949_v9 = vsel %vm1917_vm0, %v3258_v27, %v1885_v10  ;;  %v1833_v39 = vmul.f32 %v2712_v35, %v3416_v6  ;;  %v1694_v25 = vmul.f32 1.442695, %v1639_v24  ;;  %v2554_v16 = vadd.f32 %v3410_v1, %v3408_v58 }
 0x156   : > { %v2716_v51 = vpop.eup %2715  ;;  %1981 = vst [vmem:[%s3331_s30 + $0x68] sm:$0xff] %v1949_v9  ;;  %v1839_v18 = vmul.f32 %v2714_v42, %v3426_v54  ;;  %v1793_v5 = vadd.f32 2.0, %v3504_v63  ;;  %v1638_v56 = vmin.f32 %v3518_v57, 20.0  ;;  %v1641_v28 = vmin.f32 %v3528_v45, 20.0 }
 0x157   : > { %v1884_v23 = vmul.f32 %v1833_v39, %v3281_v46  ;;  %v1728_v27 = vadd.f32 2.0, %v2716_v51  ;;  %v3540_v21 = vadd.f32 %v2553_v4, %v3190_v59  ;;  %v2555_v39 = vadd.f32 %v3420_v14, %v3418_v12 }
 0x158   : > { %v1887_v6 = vmul.f32 %v1839_v18, %v3286_v50  ;;  %2727 = vrcp.f32 %v1793_v5  ;;  %v1692_v20 = vmul.f32 1.442695, %v1638_v56  ;;  %v1698_v58 = vmul.f32 1.442695, %v1641_v28 }
 0x159   : > { %v1948_v54 = vsel %vm1916_vm1, %v3281_v46, %v1884_v23  ;;  %v3525_v44 = vmul.f32 %v2716_v51, %v1728_v27  ;;  %2729 = vpow2.f32 %v1694_v25  ;;  %v2718_v33 = vpop.eup %2717  ;;  %v1640_v61 = vmin.f32 %v3540_v21, 20.0 }
 0x15a   : > { %1980 = vst [vmem:[%s3331_s30 + $0x60] sm:$0xff] %v1948_v54  ;;  %v1951_v0 = vsel %vm1919_vm2, %v3286_v50, %v1887_v6  ;;  %v2720_v8 = vpop.eup %2719  ;;  %v1731_v17 = vadd.f32 2.0, %v2718_v33  ;;  %2731 = vpow2.f32 %v1692_v20  ;;  %v3543_v50 = vadd.f32 %v2554_v16, %v3190_v59 }
 0x15b   : > { %1983 = vst [vmem:[%s3331_s30 + $0x78] sm:$0xff] %v1951_v0  ;;  %v1792_v46 = vadd.f32 2.0, %v3525_v44  ;;  %v1730_v48 = vadd.f32 2.0, %v2720_v8  ;;  %v1696_v35 = vmul.f32 1.442695, %v1640_v61  ;;  %v2556_v51 = vadd.f32 %v3441_v29, %v3439_v26 }
 0x15c   : > { %v2722_v15 = vpop.eup %2721  ;;  %v3546_v37 = vmul.f32 %v2718_v33, %v1731_v17  ;;  %v1643_v62 = vmin.f32 %v3543_v50, 20.0  ;;  %v2557_v18 = vadd.f32 %v3451_v32, %v3449_v3  ;;  %v3569_v27 = vadd.f32 %v2555_v39, %v3190_v59 }
 0x15d   : > { %v1837_v11 = vmul.f32 %v2722_v15, %v3472_v34  ;;  %2733 = vrcp.f32 %v1792_v46  ;;  %v2724_v1 = vpop.eup %2723  ;;  %v3548_v22 = vmul.f32 %v2720_v8, %v1730_v48  ;;  %v3574_v25 = vadd.f32 %v2556_v51, %v3190_v59 }
 0x15e   : > { %v1795_v10 = vadd.f32 2.0, %v3546_v37  ;;  %v1733_v31 = vadd.f32 2.0, %v2724_v1  ;;  %2735 = vpow2.f32 %v1698_v58  ;;  %v1702_v52 = vmul.f32 1.442695, %v1643_v62  ;;  %v2726_v2 = vpop.eup %2725 }
 0x15f   : > { %v1886_v30 = vmul.f32 %v1837_v11, %v3339_v36  ;;  %v1794_v34 = vadd.f32 2.0, %v3548_v22  ;;  %v1732_v24 = vadd.f32 2.0, %v2726_v2  ;;  %v1642_v29 = vmin.f32 %v3569_v27, 20.0 }
 0x160   : > { %2737 = vrcp.f32 %v1795_v10  ;;  %v3557_v9 = vmul.f32 %v2724_v1, %v1733_v31  ;;  %v1645_v6 = vmin.f32 %v3574_v25, 20.0  ;;  %v3585_v20 = vadd.f32 %v2557_v18, %v3190_v59 }
 0x161   : > { %v1950_v42 = vsel %vm1918_vm3, %v3339_v36, %v1886_v30  ;;  %2739 = vrcp.f32 %v1794_v34  ;;  %v3571_v12 = vmul.f32 %v2726_v2, %v1732_v24  ;;  %v1700_v0 = vmul.f32 1.442695, %v1642_v29 }
 0x162   : > { %v2728_v55 = vpop.eup %2727  ;;  %1982 = vst [vmem:[%s3331_s30 + $0x70] sm:$0xff] %v1950_v42  ;;  %v1797_v36 = vadd.f32 2.0, %v3557_v9  ;;  %2741 = vpow2.f32 %v1696_v35  ;;  %v1706_v8 = vmul.f32 1.442695, %v1645_v6  ;;  %vm1920_vm5 = vcmp.gt.f32.partialorder %v3406_v49, 20.0 }
 0x163   : > { %v2730_v5 = vpop.eup %2729  ;;  %v1843_v23 = vmul.f32 %v2728_v55, %v3504_v63  ;;  %2743 = vpow2.f32 %v1702_v52  ;;  %v1796_v32 = vadd.f32 2.0, %v3571_v12  ;;  %v2559_v1 = vadd.f32 %v3479_v40, %v3477_v43 }
 0x164   : > { %v1735_v14 = vadd.f32 2.0, %v2730_v5  ;;  %2745 = vrcp.f32 %v1797_v36  ;;  %v2732_v3 = vpop.eup %2731  ;;  %vm1923_vm6 = vcmp.gt.f32.partialorder %v3445_v41, 20.0  ;;  %vm1922_vm7 = vcmp.gt.f32.partialorder %v3456_v53, 20.0 }
 0x165   : > { %v1889_v26 = vmul.f32 %v1843_v23, %v3374_v19  ;;  %v1734_v33 = vadd.f32 2.0, %v2732_v3  ;;  %2747 = vrcp.f32 %v1796_v32  ;;  %vm1925_vm8 = vcmp.gt.f32.partialorder %v3475_v13, 20.0 }
 0x166   : > { %v3580_v63 = vmul.f32 %v2730_v5, %v1735_v14  ;;  %2749 = vpow2.f32 %v1700_v0  ;;  %vm1924_vm9 = vcmp.gt.f32.partialorder %v3483_v38, 20.0  ;;  %vm1927_vm10 = vcmp.gt.f32.partialorder %v3502_v7, 20.0 }
 0x167   : > { %v2734_v56 = vpop.eup %2733  ;;  %v1953_v54 = vsel %vm1921_vm4, %v3374_v19, %v1889_v26  ;;  %v3591_v17 = vmul.f32 %v2732_v3, %v1734_v33  ;;  %v1644_v19 = vmin.f32 %v3585_v20, 20.0  ;;  %vm1926_vm11 = vcmp.gt.f32.partialorder %v3518_v57, 20.0 }
 0x168   : > { %1985 = vst [vmem:[%s3331_s30 + $0x88] sm:$0xff] %v1953_v54  ;;  %v1841_v4 = vmul.f32 %v2734_v56, %v3525_v44  ;;  %v1799_v16 = vadd.f32 2.0, %v3580_v63  ;;  %v2736_v46 = vpop.eup %2735  ;;  %v2558_v44 = vadd.f32 %v3468_v60, %v3466_v47  ;;  %v3611_v60 = vadd.f32 %v2559_v1, %v3190_v59 }
 0x169   : > { %v1737_v15 = vadd.f32 2.0, %v2736_v46  ;;  %v1798_v11 = vadd.f32 2.0, %v3591_v17  ;;  %v1704_v58 = vmul.f32 1.442695, %v1644_v19  ;;  %vm1929_vm12 = vcmp.gt.f32.partialorder %v3528_v45, 20.0 }
 0x16a   : > { %v1888_v28 = vmul.f32 %v1841_v4, %v3406_v49  ;;  %2751 = vrcp.f32 %v1799_v16  ;;  %v2738_v48 = vpop.eup %2737  ;;  %v3605_v31 = vadd.f32 %v2558_v44, %v3190_v59  ;;  %v1646_v18 = vmin.f32 %v3611_v60, 20.0 }
 0x16b   : > { %2753 = vpow2.f32 %v1706_v8  ;;  %v2740_v61 = vpop.eup %2739  ;;  %v1847_v30 = vmul.f32 %v2738_v48, %v3546_v37  ;;  %v3602_v10 = vmul.f32 %v2736_v46, %v1737_v15  ;;  %vm1928_vm13 = vcmp.gt.f32.partialorder %v3540_v21, 20.0 }
 0x16c   : > { %v1952_v62 = vsel %vm1920_vm5, %v3406_v49, %v1888_v28  ;;  %v2742_v34 = vpop.eup %2741  ;;  %v1845_v47 = vmul.f32 %v2740_v61, %v3548_v22  ;;  %2755 = vrcp.f32 %v1798_v11  ;;  %v1647_v22 = vmin.f32 %v3605_v31, 20.0 }
 0x16d   : > { %1984 = vst [vmem:[%s3331_s30 + $0x80] sm:$0xff] %v1952_v62  ;;  %v2744_v43 = vpop.eup %2743  ;;  %v1891_v49 = vmul.f32 %v1847_v30, %v3445_v41  ;;  %v1801_v40 = vadd.f32 2.0, %v3602_v10  ;;  %v1736_v37 = vadd.f32 2.0, %v2742_v34  ;;  %2757 = vpow2.f32 %v1704_v58 }
 0x16e   : > { %v2746_v35 = vpop.eup %2745  ;;  %v1890_v52 = vmul.f32 %v1845_v47, %v3456_v53  ;;  %v1739_v2 = vadd.f32 2.0, %v2744_v43  ;;  %v1710_v51 = vmul.f32 1.442695, %v1647_v22  ;;  %v1708_v26 = vmul.f32 1.442695, %v1646_v18 }
 0x16f   : > { %v1955_v42 = vsel %vm1923_vm6, %v3445_v41, %v1891_v49  ;;  %v1851_v59 = vmul.f32 %v2746_v35, %v3557_v9  ;;  %2759 = vrcp.f32 %v1801_v40  ;;  %v1768_v39 = vmul.f32 %v2742_v34, %v1736_v37  ;;  %v2748_v5 = vpop.eup %2747 }
 0x170   : > { %1987 = vst [vmem:[%s3331_s30 + $0x98] sm:$0xff] %v1955_v42  ;;  %v1954_v55 = vsel %vm1922_vm7, %v3456_v53, %v1890_v52  ;;  %v1771_v24 = vmul.f32 %v2744_v43, %v1739_v2  ;;  %v2750_v41 = vpop.eup %2749  ;;  %v1849_v9 = vmul.f32 %v2748_v5, %v3571_v12  ;;  %2761 = vpow2.f32 %v1710_v51 }
 0x171   : > { %1986 = vst [vmem:[%s3331_s30 + $0x90] sm:$0xff] %v1954_v55  ;;  %v1893_v23 = vmul.f32 %v1851_v59, %v3475_v13  ;;  %v1800_v36 = vadd.f32 2.0, %v1768_v39  ;;  %v1738_v3 = vadd.f32 2.0, %v2750_v41  ;;  %vm1931_vm14 = vcmp.gt.f32.partialorder %v3543_v50, 20.0 }
 0x172   : > { %v1803_v14 = vadd.f32 2.0, %v1771_v24  ;;  %v1892_v6 = vmul.f32 %v1849_v9, %v3483_v38  ;;  %vm1930_vm15 = vcmp.gt.f32.partialorder %v3569_v27, 20.0  ;;  %vm1933_vm0 = vcmp.gt.f32.partialorder %v3574_v25, 20.0 }
 0x173   : > { %v1957_v53 = vsel %vm1925_vm8, %v3475_v13, %v1893_v23  ;;  %2763 = vrcp.f32 %v1800_v36  ;;  %v1770_v12 = vmul.f32 %v2750_v41, %v1738_v3  ;;  %vm1932_vm1 = vcmp.gt.f32.partialorder %v3585_v20, 20.0 }
 0x174   : > { %v2752_v29 = vpop.eup %2751  ;;  %1989 = vst [vmem:[%s3331_s30 + $0xa8] sm:$0xff] %v1957_v53  ;;  %2765 = vrcp.f32 %v1803_v14  ;;  %v1956_v0 = vsel %vm1924_vm9, %v3483_v38, %v1892_v6  ;;  %vm1935_vm2 = vcmp.gt.f32.partialorder %v3605_v31, 20.0  ;;  %vm1934_vm3 = vcmp.gt.f32.partialorder %v3611_v60, 20.0 }
 0x175   : > { %v2754_v32 = vpop.eup %2753  ;;  %v1855_v56 = vmul.f32 %v2752_v29, %v3580_v63  ;;  %2767 = vpow2.f32 %v1708_v26  ;;  %1988 = vst [vmem:[%s3331_s30 + $0xa0] sm:$0xff] %v1956_v0  ;;  %v1802_v63 = vadd.f32 2.0, %v1770_v12 }
 0x176   : > { %v1741_v54 = vadd.f32 2.0, %v2754_v32  ;;  %v2756_v33 = vpop.eup %2755 }
 0x177   : > { %v1895_v13 = vmul.f32 %v1855_v56, %v3502_v7  ;;  %v2758_v4 = vpop.eup %2757  ;;  %v1853_v16 = vmul.f32 %v2756_v33, %v3591_v17  ;;  %2769 = vrcp.f32 %v1802_v63 }
 0x178   : > { %v1773_v8 = vmul.f32 %v2754_v32, %v1741_v54  ;;  %v1740_v19 = vadd.f32 2.0, %v2758_v4 }
 0x179   : > { %v1959_v46 = vsel %vm1927_vm10, %v3502_v7, %v1895_v13  ;;  %v2760_v28 = vpop.eup %2759  ;;  %v1894_v15 = vmul.f32 %v1853_v16, %v3518_v57 }
 0x17a   : > { %1991 = vst [vmem:[%s3331_s30 + $0xb8] sm:$0xff] %v1959_v46  ;;  %v1805_v38 = vadd.f32 2.0, %v1773_v8  ;;  %v1859_v44 = vmul.f32 %v2760_v28, %v3602_v10  ;;  %v1772_v48 = vmul.f32 %v2758_v4, %v1740_v19  ;;  %v2762_v11 = vpop.eup %2761 }
 0x17b   : > { %v1958_v17 = vsel %vm1926_vm11, %v3518_v57, %v1894_v15  ;;  %v1743_v61 = vadd.f32 2.0, %v2762_v11 }
 0x17c   : > { %2771 = vrcp.f32 %v1805_v38  ;;  %1990 = vst [vmem:[%s3331_s30 + $0xb0] sm:$0xff] %v1958_v17  ;;  %v1897_v7 = vmul.f32 %v1859_v44, %v3528_v45  ;;  %v1804_v58 = vadd.f32 2.0, %v1772_v48 }
 0x17d   : > { %v2764_v1 = vpop.eup %2763  ;;  %v1775_v47 = vmul.f32 %v2762_v11, %v1743_v61 }
 0x17e   : > { %v2766_v62 = vpop.eup %2765  ;;  %v1961_v30 = vsel %vm1929_vm12, %v3528_v45, %v1897_v7  ;;  %v1857_v34 = vmul.f32 %v2764_v1, %v1768_v39  ;;  %2773 = vrcp.f32 %v1804_v58 }
 0x17f   : > { %v2768_v10 = vpop.eup %2767  ;;  %1993 = vst [vmem:[%s3331_s30 + $0xc8] sm:$0xff] %v1961_v30  ;;  %v1863_v57 = vmul.f32 %v2766_v62, %v1771_v24  ;;  %v1807_v37 = vadd.f32 2.0, %v1775_v47 }
 0x180   : > { %v1896_v43 = vmul.f32 %v1857_v34, %v3540_v21  ;;  %v1742_v49 = vadd.f32 2.0, %v2768_v10 }
 0x181   : > { %v1899_v40 = vmul.f32 %v1863_v57, %v3543_v50  ;;  %v2770_v52 = vpop.eup %2769  ;;  %2775 = vrcp.f32 %v1807_v37 }
 0x182   : > { %v1960_v35 = vsel %vm1928_vm13, %v3540_v21, %v1896_v43  ;;  %v1774_v45 = vmul.f32 %v2768_v10, %v1742_v49  ;;  %v1861_v22 = vmul.f32 %v2770_v52, %v1770_v12 }
 0x183   : > { %1992 = vst [vmem:[%s3331_s30 + $0xc0] sm:$0xff] %v1960_v35  ;;  %v1963_v2 = vsel %vm1931_vm14, %v3543_v50, %v1899_v40 }
 0x184   : > { %1995 = vst [vmem:[%s3331_s30 + $0xd8] sm:$0xff] %v1963_v2  ;;  %v1806_v42 = vadd.f32 2.0, %v1774_v45  ;;  %v1898_v39 = vmul.f32 %v1861_v22, %v3569_v27 }
 0x186   : > { %v2772_v59 = vpop.eup %2771  ;;  %2777 = vrcp.f32 %v1806_v42  ;;  %v1962_v24 = vsel %vm1930_vm15, %v3569_v27, %v1898_v39 }
 0x187   : > { %v1867_v55 = vmul.f32 %v2772_v59, %v1773_v8  ;;  %1994 = vst [vmem:[%s3331_s30 + $0xd0] sm:$0xff] %v1962_v24 }
 0x188   : > { %v2774_v21 = vpop.eup %2773 }
 0x189   : > { %v1901_v50 = vmul.f32 %v1867_v55, %v3574_v25  ;;  %v1865_v51 = vmul.f32 %v2774_v21, %v1772_v48 }
 0x18b   : > { %v1965_v18 = vsel %vm1933_vm0, %v3574_v25, %v1901_v50  ;;  %v1900_v5 = vmul.f32 %v1865_v51, %v3585_v20  ;;  %v2776_v23 = vpop.eup %2775 }
 0x18c   : > { %1997 = vst [vmem:[%s3331_s30 + $0xe8] sm:$0xff] %v1965_v18  ;;  %v1871_v27 = vmul.f32 %v2776_v23, %v1775_v47 }
 0x18d   : > { %v1964_v36 = vsel %vm1932_vm1, %v3585_v20, %v1900_v5 }
 0x18e   : > { %1996 = vst [vmem:[%s3331_s30 + $0xe0] sm:$0xff] %v1964_v36  ;;  %v1903_v9 = vmul.f32 %v1871_v27, %v3605_v31 }
 0x190   : > { %v2778_v41 = vpop.eup %2777  ;;  %v1967_v14 = vsel %vm1935_vm2, %v3605_v31, %v1903_v9 }
 0x191   : > { %v1869_v25 = vmul.f32 %v2778_v41, %v1774_v45  ;;  %1999 = vst [vmem:[%s3331_s30 + $0xf8] sm:$0xff] %v1967_v14 }
 0x193   : > { %v1902_v26 = vmul.f32 %v1869_v25, %v3611_v60 }
 0x195   : > { %v1966_v20 = vsel %vm1934_vm3, %v3611_v60, %v1902_v26 }
 0x196   : > { %1998 = vst [vmem:[%s3331_s30 + $0xf0] sm:$0xff] %v1966_v20 }
 0x197   : > { %2792 = shalt.err (!%p2789_p5)
}
 0x198   : > { %s2793_s19 = scalar_lea.hbm %s3678_s8, 4096  ;;  %s2797_s26 = scalar_lea.hbm %s3736_s3, 8192 }
 0x199   : > { %p2794_p6 = scmp.ne.s32.totalorder %s3678_s8, %s2793_s19  ;;  %p2798_p10 = scmp.lt.u32.totalorder %s3678_s8, %s3736_s3 }
 0x19a   : > { %p2799_p11 = scmp.lt.u32.totalorder %s2797_s26, %s2793_s19  ;;  %p2801_p13 = scmp.lt.u32.totalorder %s2793_s19, %s3678_s8 }
 0x19b   : > { %p2795_p7 = pnand %p2794_p6, %p2923_p4 }
 0x19c   : > { %p2800_p12 = por %p2799_p11, %p2798_p10 }
 0x19d   : > { %p2796_p9 = pneg %p2795_p7 }
 0x19e   : > { %p2802_p0 = por %p2801_p13, %p2800_p12 }
 0x1a0   : > { %p2803_p1 = pnand %p2802_p0, %p2796_p9 }
 0x1a2   : > { %2806 = shalt.err (!%p2803_p1)
}
 0x1a3   : > { %s2861_s29 = smov 128   ;;  %s2862_s30 = smov 8  }
 0x1a4   : > { %2593 = dma.vmem_to_hbm [thread:$0]  (%p2923_p4), %s3680_s5, 4096, %s3678_s8, %s3687_s15, %s2861_s29, %s2861_s29, %s2862_s30  }
 0x1a5 PF: > { %p2599_p2 = scmp.ge.s32.totalorder %s2857_s17, 2  ;;  %s2033_s4 = sand.u32 1, %s2837_s12  }
 0x1a6   : > { %s2034_s6 = scalar_lea.sflag [#allocation4], %s2033_s4 }
 0x1a7   : > { %p2596_p3 = pnand %p2599_p2, %p2930_p8 }
 0x1a9   : > { %2832 = dma.done.wait (!%p2596_p3), %s2034_s6, 4096  }
 0x1aa   : > { %2834 = vsyncadd (!%p2596_p3), %s2034_s6, 4294963200  ;;  %s16_s17 = sadd.s32 1, %s2857_s17   ;;  %s3741_s12 = smov %s2841_s13 }
 0x1ab   : > { %p13_p5 = scmp.ge.s32.totalorder %s16_s17, 4   ;;  %s3742_s13 = smov %s2845_s14 }
 0x1ac   : > { %s3743_s14 = smov %s2936_s25  ;;  %s3744_s15 = smov %s2853_s16 }
 0x1ad   : > { %s3745_s16 = smov %s3747_s20  ;;  %15 = sbr.rel (!%p13_p5) target bundleno = 4 (0x4), region = 75 }
 0x1b4   :  { %2039 = vsyncpa [#allocation4], 1 }
 0x1b5   :  { %2041 = vsyncpa [#allocation4 + $0x1], 1 }

</bundles_post_ra>
